<compile_context>
chip_gen: v7x
topology: tpu7x:2x2x1
jax: 0.10.0
libtpu: 0.0.40
codegen_flags: <defaults>
</compile_context>

<pallas_src>
import functools

import jax
import jax.numpy as jnp
from jax.experimental import pallas as pl
from jax.experimental.pallas import tpu as pltpu

_LANES = 1024      # lane-dense last dim (large multiple of 128)
_MAX_ROWS = 512    # 512 x 1024 f32 = 2 MiB/block -> <= 8 MiB with in+out double-buffered


def _fmix32(x):
    """murmur3 32-bit finalizer (avalanche mix) -- cheap VPU integer ops."""
    x = x ^ (x >> 16)
    x = x * jnp.uint32(0x85EBCA6B)
    x = x ^ (x >> 13)
    x = x * jnp.uint32(0xC2B2AE35)
    x = x ^ (x >> 16)
    return x


def _gaussian_noise_kernel(seed_ref, x_ref, o_ref):
    tm, lanes = x_ref.shape          # static block shape
    h = tm // 2                      # tm is a multiple of 8 -> even

    seed = seed_ref[0].astype(jnp.uint32)
    tile = pl.program_id(0).astype(jnp.uint32)

    # Unique counter per Box-Muller pair across the whole (padded) array:
    # pair_idx = (tile * h + local_row) * lanes + lane.  This makes every grid
    # step (and every TensorCore) emit distinct noise without reseeding.
    row = jax.lax.broadcasted_iota(jnp.int32, (h, lanes), 0).astype(jnp.uint32)
    col = jax.lax.broadcasted_iota(jnp.int32, (h, lanes), 1).astype(jnp.uint32)
    pair_idx = (tile * jnp.uint32(h) + row) * jnp.uint32(lanes) + col

    # Two decorrelated uniform bit streams from the counter-based hash.
    k = pair_idx * jnp.uint32(0x9E3779B1) + seed
    b1 = _fmix32(k)
    b2 = _fmix32(k + jnp.uint32(0x6A09E667))

    # Mantissa bit-trick: top 23 bits -> float in [1, 2), shift into range.
    one = jnp.uint32(0x3F800000)
    f1 = jax.lax.bitcast_convert_type((b1 >> 9) | one, jnp.float32)  # [1, 2)
    f2 = jax.lax.bitcast_convert_type((b2 >> 9) | one, jnp.float32)  # [1, 2)
    u1 = 2.0 - f1                    # (0, 1]  -- safe for log
    u2 = f2 - 1.0                    # [0, 1)

    # Box-Muller: one (u1, u2) pair -> two standard normals (cos and sin),
    # halving the log/sqrt EUP work and the hash work per element.
    r = jnp.sqrt(-2.0 * jnp.log(u1))
    theta = (2.0 * jnp.pi) * u2
    z_cos = r * jnp.cos(theta)
    z_sin = r * jnp.sin(theta)

    o_ref[:h, :] = (x_ref[:h, :].astype(jnp.float32) + z_cos).astype(o_ref.dtype)
    o_ref[h:, :] = (x_ref[h:, :].astype(jnp.float32) + z_sin).astype(o_ref.dtype)


@functools.partial(jax.jit, static_argnames=("training",))
def gaussian_noise_layer(x, seed, training=True):
    """Pallas equivalent of GaussianNoiseLayer.forward.

    Eval mode (training=False) is the identity, exactly like the PyTorch
    module.  Training mode returns x + standard-normal noise of x's shape and
    dtype.  The exact torch RNG stream is not reproduced (different generator).
    """
    if not training:
        return x

    total = x.size
    # Lane-dense padded 2-D slab: (rows_padded, _LANES), rows_padded a multiple
    # of the tile height so every grid step stores full, unmasked vregs.
    rows = -(-total // _LANES)
    rows8 = ((rows + 7) // 8) * 8
    tile_rows = min(_MAX_ROWS, rows8)
    rows_padded = (-(-rows // tile_rows)) * tile_rows
    padded_total = rows_padded * _LANES

    flat = x.reshape(-1)
    if padded_total != total:
        flat = jnp.pad(flat, (0, padded_total - total))
    x2d = flat.reshape(rows_padded, _LANES)

    seed_arr = jnp.asarray(seed, dtype=jnp.int32).reshape((1,))
    grid = (rows_padded // tile_rows,)

    out2d = pl.pallas_call(
        _gaussian_noise_kernel,
        out_shape=jax.ShapeDtypeStruct(x2d.shape, x2d.dtype),
        grid=grid,
        in_specs=[
            pl.BlockSpec(memory_space=pltpu.MemorySpace.SMEM),       # seed scalar
            pl.BlockSpec((tile_rows, _LANES), lambda i: (i, 0)),     # x tile
        ],
        out_specs=pl.BlockSpec((tile_rows, _LANES), lambda i: (i, 0)),
        compiler_params=pltpu.CompilerParams(
            dimension_semantics=("parallel",),        # shard grid across TCs (v7x)
            vmem_limit_bytes=64 * 1024 * 1024,
        ),
    )(seed_arr, x2d)

    return out2d.reshape(-1)[:total].reshape(x.shape)


if __name__ == "__main__":
    key = jax.random.PRNGKey(0)
    x = jax.random.normal(key, (2, 4, 16, 16), dtype=jnp.float32)  # NCHW

    # Training mode: x + noise.
    y = jax.block_until_ready(gaussian_noise_layer(x, seed=1234, training=True))

    # Eval mode: identity (matches `if self.training == False: return x`).
    y_eval = jax.block_until_ready(gaussian_noise_layer(x, seed=1234, training=False))

    assert y.shape == x.shape and y.dtype == x.dtype
    assert bool(jnp.allclose(y_eval, x))

    # The added noise should be roughly standard normal.
    noise = y - x
    assert abs(float(noise.mean())) < 0.2
    assert abs(float(noise.std()) - 1.0) < 0.2

    print("KERNEL_OK")
</pallas_src>

<mosaic_0001>
module attributes {stable_mosaic.version = 11 : i64} {
  func.func @_gaussian_noise_kernel(%arg0: i32, %arg1: memref<1xi32, #tpu.memory_space<smem>>, %arg2: memref<8x1024xf32, #tpu.memory_space<vmem>>, %arg3: memref<8x1024xf32, #tpu.memory_space<vmem>>) attributes {dimension_semantics = [#tpu.dimension_semantics<parallel>], iteration_bounds = array<i64: 1>, scalar_prefetch = 0 : i64, scratch_operands = 0 : i64, tpu.core_type = #tpu.core_type<tc>, window_params = [{transform_indices = @transform_0, window_bounds = array<i64: 1>}, {transform_indices = @transform_1, window_bounds = array<i64: 8, 1024>}, {transform_indices = @transform_2, window_bounds = array<i64: 8, 1024>}]} {
    %c0 = arith.constant 0 : index
    %0 = memref.load %arg1[%c0] : memref<1xi32, #tpu.memory_space<smem>>
    %1 = tpu.iota {dimensions = array<i32: 0>} : vector<4x1024xi32>
    %2 = tpu.iota {dimensions = array<i32: 1>} : vector<4x1024xi32>
    %c4_i32 = arith.constant 4 : i32
    %3 = arith.muli %arg0, %c4_i32 : i32
    %4 = vector.broadcast %3 : i32 to vector<4x1024xi32>
    %5 = arith.addi %4, %1 : vector<4x1024xi32>
    %c1024_i32 = arith.constant 1024 : i32
    %6 = vector.broadcast %c1024_i32 : i32 to vector<4x1024xi32>
    %7 = arith.muli %5, %6 : vector<4x1024xi32>
    %8 = arith.addi %7, %2 : vector<4x1024xi32>
    %c-1640531535_i32 = arith.constant -1640531535 : i32
    %9 = vector.broadcast %c-1640531535_i32 : i32 to vector<4x1024xi32>
    %10 = arith.muli %8, %9 : vector<4x1024xi32>
    %11 = vector.broadcast %0 : i32 to vector<4x1024xi32>
    %12 = arith.addi %10, %11 : vector<4x1024xi32>
    %c16_i32 = arith.constant 16 : i32
    %13 = vector.broadcast %c16_i32 : i32 to vector<4x1024xi32>
    %14 = arith.shrui %12, %13 : vector<4x1024xi32>
    %15 = arith.xori %12, %14 : vector<4x1024xi32>
    %c-2048144789_i32 = arith.constant -2048144789 : i32
    %16 = vector.broadcast %c-2048144789_i32 : i32 to vector<4x1024xi32>
    %17 = arith.muli %15, %16 : vector<4x1024xi32>
    %c13_i32 = arith.constant 13 : i32
    %18 = vector.broadcast %c13_i32 : i32 to vector<4x1024xi32>
    %19 = arith.shrui %17, %18 : vector<4x1024xi32>
    %20 = arith.xori %17, %19 : vector<4x1024xi32>
    %c-1028477387_i32 = arith.constant -1028477387 : i32
    %21 = vector.broadcast %c-1028477387_i32 : i32 to vector<4x1024xi32>
    %22 = arith.muli %20, %21 : vector<4x1024xi32>
    %c16_i32_0 = arith.constant 16 : i32
    %23 = vector.broadcast %c16_i32_0 : i32 to vector<4x1024xi32>
    %24 = arith.shrui %22, %23 : vector<4x1024xi32>
    %25 = arith.xori %22, %24 : vector<4x1024xi32>
    %c1779033703_i32 = arith.constant 1779033703 : i32
    %26 = vector.broadcast %c1779033703_i32 : i32 to vector<4x1024xi32>
    %27 = arith.addi %12, %26 : vector<4x1024xi32>
    %c16_i32_1 = arith.constant 16 : i32
    %28 = vector.broadcast %c16_i32_1 : i32 to vector<4x1024xi32>
    %29 = arith.shrui %27, %28 : vector<4x1024xi32>
    %30 = arith.xori %27, %29 : vector<4x1024xi32>
    %c-2048144789_i32_2 = arith.constant -2048144789 : i32
    %31 = vector.broadcast %c-2048144789_i32_2 : i32 to vector<4x1024xi32>
    %32 = arith.muli %30, %31 : vector<4x1024xi32>
    %c13_i32_3 = arith.constant 13 : i32
    %33 = vector.broadcast %c13_i32_3 : i32 to vector<4x1024xi32>
    %34 = arith.shrui %32, %33 : vector<4x1024xi32>
    %35 = arith.xori %32, %34 : vector<4x1024xi32>
    %c-1028477387_i32_4 = arith.constant -1028477387 : i32
    %36 = vector.broadcast %c-1028477387_i32_4 : i32 to vector<4x1024xi32>
    %37 = arith.muli %35, %36 : vector<4x1024xi32>
    %c16_i32_5 = arith.constant 16 : i32
    %38 = vector.broadcast %c16_i32_5 : i32 to vector<4x1024xi32>
    %39 = arith.shrui %37, %38 : vector<4x1024xi32>
    %40 = arith.xori %37, %39 : vector<4x1024xi32>
    %c9_i32 = arith.constant 9 : i32
    %41 = vector.broadcast %c9_i32 : i32 to vector<4x1024xi32>
    %42 = arith.shrui %25, %41 : vector<4x1024xi32>
    %c1065353216_i32 = arith.constant 1065353216 : i32
    %43 = vector.broadcast %c1065353216_i32 : i32 to vector<4x1024xi32>
    %44 = arith.ori %42, %43 : vector<4x1024xi32>
    %45 = tpu.bitcast %44 : vector<4x1024xi32> -> vector<4x1024xf32>
    %c9_i32_6 = arith.constant 9 : i32
    %46 = vector.broadcast %c9_i32_6 : i32 to vector<4x1024xi32>
    %47 = arith.shrui %40, %46 : vector<4x1024xi32>
    %c1065353216_i32_7 = arith.constant 1065353216 : i32
    %48 = vector.broadcast %c1065353216_i32_7 : i32 to vector<4x1024xi32>
    %49 = arith.ori %47, %48 : vector<4x1024xi32>
    %50 = tpu.bitcast %49 : vector<4x1024xi32> -> vector<4x1024xf32>
    %cst = arith.constant 2.000000e+00 : f32
    %51 = vector.broadcast %cst : f32 to vector<4x1024xf32>
    %52 = arith.subf %51, %45 : vector<4x1024xf32>
    %cst_8 = arith.constant 1.000000e+00 : f32
    %53 = vector.broadcast %cst_8 : f32 to vector<4x1024xf32>
    %54 = arith.subf %50, %53 : vector<4x1024xf32>
    %55 = math.log %52 : vector<4x1024xf32>
    %cst_9 = arith.constant -2.000000e+00 : f32
    %56 = vector.broadcast %cst_9 : f32 to vector<4x1024xf32>
    %57 = arith.mulf %56, %55 : vector<4x1024xf32>
    %58 = math.sqrt %57 : vector<4x1024xf32>
    %cst_10 = arith.constant 6.28318548 : f32
    %59 = vector.broadcast %cst_10 : f32 to vector<4x1024xf32>
    %60 = arith.mulf %59, %54 : vector<4x1024xf32>
    %61 = math.cos %60 : vector<4x1024xf32>
    %62 = arith.mulf %58, %61 : vector<4x1024xf32>
    %63 = math.sin %60 : vector<4x1024xf32>
    %64 = arith.mulf %58, %63 : vector<4x1024xf32>
    %c0_11 = arith.constant 0 : index
    %c0_12 = arith.constant 0 : index
    %65 = vector.load %arg2[%c0_11, %c0_12] : memref<8x1024xf32, #tpu.memory_space<vmem>>, vector<4x1024xf32>
    %66 = arith.addf %65, %62 : vector<4x1024xf32>
    %c0_13 = arith.constant 0 : index
    %c0_14 = arith.constant 0 : index
    %67 = vector.load %arg3[%c0_13, %c0_14] : memref<8x1024xf32, #tpu.memory_space<vmem>>, vector<4x1024xf32>
    tpu.vector_store %arg3[%c0_13, %c0_14], %66 {strides = array<i32>} : memref<8x1024xf32, #tpu.memory_space<vmem>>, vector<4x1024xf32>,
    %c4 = arith.constant 4 : index
    %c0_15 = arith.constant 0 : index
    %68 = vector.load %arg2[%c4, %c0_15] : memref<8x1024xf32, #tpu.memory_space<vmem>>, vector<4x1024xf32>
    %69 = arith.addf %68, %64 : vector<4x1024xf32>
    %c4_16 = arith.constant 4 : index
    %c0_17 = arith.constant 0 : index
    %70 = vector.load %arg3[%c4_16, %c0_17] : memref<8x1024xf32, #tpu.memory_space<vmem>>, vector<4x1024xf32>
    tpu.vector_store %arg3[%c4_16, %c0_17], %69 {strides = array<i32>} : memref<8x1024xf32, #tpu.memory_space<vmem>>, vector<4x1024xf32>,
    return
  }
  func.func @transform_0(%arg0: i32) -> i32 {
    %c0_i32 = arith.constant 0 : i32
    %c0_i32_0 = arith.constant 0 : i32
    return %c0_i32 : i32
  }
  func.func @transform_1(%arg0: i32) -> (i32, i32) {
    %c0_i32 = arith.constant 0 : i32
    %c0_i32_0 = arith.constant 0 : i32
    return %arg0, %c0_i32 : i32, i32
  }
  func.func @transform_2(%arg0: i32) -> (i32, i32) {
    %c0_i32 = arith.constant 0 : i32
    %c0_i32_0 = arith.constant 0 : i32
    return %arg0, %c0_i32 : i32, i32
  }
}

</mosaic_0001>

<bundles_post_ra>
// kernel: gaussian_noise_layer.1
= control target key start
LH: loop header
LB: loop body
LE: loop exit
PB: predicated region body
PF: predicated region fallthrough
CT: control target
= control target key end

     0   :  { %8 = vsyncpa [#allocation4], 0  ;;  %s3476_s0 = inlined_call_operand.<no memory space> [shape: s32[1], index: 0, kind: input, shape index: {}]   ;;  %s3477_s1 = inlined_call_operand.hbm [shape: f32[8,1024], index: 1, kind: input, shape index: {}]   ;;  %s3478_s2 = inlined_call_operand.hbm [shape: f32[8,1024], index: 2, kind: output, shape index: {}]  }
   0x1   :  { %9 = vsyncpa [#allocation5], 0  ;;  %s2337_s9 = smov [#allocation3]   ;;  %s2289_s13 = scalar_lea.hbm %s3477_s1, 1024 }
   0x2   :  { %s18_s10 = sshll.u32 %s2337_s9, 4  ;;  %p2290_p0 = scmp.ne.s32.totalorder %s3477_s1, %s2289_s13  ;;  %s19_s10 = int_to_ptr.vmem [resolvable:$true] %s18_s10 }
   0x3   :  { %p2293_p1 = scmp.lt.u32.totalorder %s2289_s13, %s3477_s1 }
   0x5   :  { %p2295_p2 = pnand %p2293_p1, %p2290_p0 }
   0x7   :  { %2298 = shalt.err (!%p2295_p2)
}
   0x8   :  { %s2299_s18 = scalar_lea.vmem %s19_s10, 1024  ;;  %p2304_p4 = scmp.lt.s32.totalorder %s19_s10, %s19_s10 }
   0x9   :  { %p2300_p3 = scmp.ne.s32.totalorder %s19_s10, %s2299_s18  ;;  %p2305_p5 = scmp.lt.s32.totalorder %s2299_s18, %s2299_s18 }
   0xb   :  { %p2306_p6 = por %p2305_p5, %p2304_p4 }
   0xd   :  { %p2307_p7 = pnand %p2306_p6, %p2300_p3 }
   0xf   :  { %2310 = shalt.err (!%p2307_p7)
}
  0x10   :  { %21 = dma.hbm_to_vmem [thread:$0]  %s3477_s1, 1024, %s19_s10, [#allocation4]  }
  0x11   :  { %2333 = dma.done.wait [#allocation4], 1024  }
  0x12   :  { %2334 = vsyncadd [#allocation4], 4294966272  ;;  %v26_v0 = vlaneseq  ;;  %v57_v18 = vstv %s3476_s0  ;;  %s2344_s0 = smov [#allocation6]  }
  0x13   :  { %s2104_s22 = sshll.u32 %s2344_s0, 4  ;;  %s2105_s22 = int_to_ptr.vmem [resolvable:$true] %s2104_s22 }
  0x14   :  { %v27_v1 = vshrl.u32 %v26_v0, 7  ;;  %v29_v2 = vand.u32 127, %v26_v0  ;;  %s2311_s23 = scalar_lea.vmem %s2105_s22, 1024  ;;  %p2316_p9 = scmp.lt.s32.totalorder %s2105_s22, %s2105_s22 }
  0x15   :  { %p2312_p8 = scmp.ne.s32.totalorder %s2105_s22, %s2311_s23  ;;  %p2317_p10 = scmp.lt.s32.totalorder %s2311_s23, %s2311_s23 }
  0x16   :  { %v30_v3 = vadd.s32 128, %v29_v2  ;;  %v40_v4 = vmul.u32 1024, %v27_v1  ;;  %v31_v5 = vadd.s32 256, %v29_v2  ;;  %v32_v8 = vadd.s32 384, %v29_v2 }
  0x17   :  { %v33_v9 = vadd.s32 512, %v29_v2  ;;  %v34_v10 = vadd.s32 640, %v29_v2  ;;  %v35_v11 = vadd.s32 768, %v29_v2  ;;  %v36_v12 = vadd.s32 896, %v29_v2  ;;  %p2318_p11 = por %p2317_p10, %p2316_p9 }
  0x18   :  { %v41_v6 = vadd.s32 %v40_v4, %v29_v2  ;;  %v42_v7 = vadd.s32 %v40_v4, %v30_v3  ;;  %v43_v13 = vadd.s32 %v40_v4, %v31_v5  ;;  %v44_v16 = vadd.s32 %v40_v4, %v32_v8 }
  0x19   :  { %v45_v17 = vadd.s32 %v40_v4, %v33_v9  ;;  %v46_v19 = vadd.s32 %v40_v4, %v34_v10  ;;  %v47_v20 = vadd.s32 %v40_v4, %v35_v11  ;;  %v48_v21 = vadd.s32 %v40_v4, %v36_v12  ;;  %p2319_p12 = pnand %p2318_p11, %p2312_p8 }
  0x1a   :  { %v49_v14 = vmul.u32 2654435761, %v41_v6  ;;  %v50_v15 = vmul.u32 2654435761, %v42_v7 }
  0x1b   :  { %v51_v22 = vmul.u32 2654435761, %v43_v13  ;;  %v52_v25 = vmul.u32 2654435761, %v44_v16 }
  0x1c   :  { %v58_v23 = vadd.s32 %v57_v18, %v49_v14  ;;  %v59_v24 = vadd.s32 %v57_v18, %v50_v15  ;;  %v53_v26 = vmul.u32 2654435761, %v45_v17  ;;  %v54_v27 = vmul.u32 2654435761, %v46_v19 }
  0x1d   :  { %v55_v28 = vmul.u32 2654435761, %v47_v20  ;;  %v56_v29 = vmul.u32 2654435761, %v48_v21  ;;  %v60_v30 = vadd.s32 %v57_v18, %v51_v22  ;;  %v61_v34 = vadd.s32 %v57_v18, %v52_v25 }
  0x1e   :  { %v66_v31 = vshrl.u32 %v58_v23, 16  ;;  %v130_v32 = vadd.s32 1779033703, %v58_v23  ;;  %v131_v33 = vadd.s32 1779033703, %v59_v24  ;;  %v67_v35 = vshrl.u32 %v59_v24, 16 }
  0x1f   :  { %v62_v36 = vadd.s32 %v57_v18, %v53_v26  ;;  %v63_v37 = vadd.s32 %v57_v18, %v54_v27  ;;  %v64_v38 = vadd.s32 %v57_v18, %v55_v28  ;;  %v68_v39 = vshrl.u32 %v60_v30, 16 }
  0x20   :  { %v65_v40 = vadd.s32 %v57_v18, %v56_v29  ;;  %v69_v41 = vshrl.u32 %v61_v34, 16  ;;  %v138_v42 = vshrl.u32 %v130_v32, 16  ;;  %v139_v43 = vshrl.u32 %v131_v33, 16 }
  0x21   :  { %v70_v44 = vshrl.u32 %v62_v36, 16  ;;  %v71_v45 = vshrl.u32 %v63_v37, 16  ;;  %v74_v46 = vxor.u32 %v66_v31, %v58_v23  ;;  %v132_v47 = vadd.s32 1779033703, %v60_v30 }
  0x22   :  { %v72_v48 = vshrl.u32 %v64_v38, 16  ;;  %v75_v49 = vxor.u32 %v67_v35, %v59_v24  ;;  %v146_v50 = vxor.u32 %v138_v42, %v130_v32  ;;  %v147_v51 = vxor.u32 %v139_v43, %v131_v33 }
  0x23   :  { %v73_v52 = vshrl.u32 %v65_v40, 16  ;;  %v76_v53 = vxor.u32 %v68_v39, %v60_v30  ;;  %v133_v54 = vadd.s32 1779033703, %v61_v34  ;;  %v134_v55 = vadd.s32 1779033703, %v62_v36 }
  0x24   :  { %v77_v56 = vxor.u32 %v69_v41, %v61_v34  ;;  %v135_v57 = vadd.s32 1779033703, %v63_v37  ;;  %v136_v58 = vadd.s32 1779033703, %v64_v38  ;;  %v154_v59 = vmul.u32 2246822507, %v146_v50 }
  0x25   :  { %v78_v60 = vxor.u32 %v70_v44, %v62_v36  ;;  %v137_v61 = vadd.s32 1779033703, %v65_v40  ;;  %v140_v62 = vshrl.u32 %v132_v47, 16  ;;  %v155_v63 = vmul.u32 2246822507, %v147_v51 }
  0x26   :  { %v79_v0 = vxor.u32 %v71_v45, %v63_v37  ;;  %v82_v1 = vmul.u32 2246822507, %v74_v46  ;;  %v83_v2 = vmul.u32 2246822507, %v75_v49  ;;  %v162_v3 = vshrl.u32 %v154_v59, 13 }
  0x27   :  { %v80_v4 = vxor.u32 %v72_v48, %v64_v38  ;;  %v81_v5 = vxor.u32 %v73_v52, %v65_v40  ;;  %v141_v6 = vshrl.u32 %v133_v54, 16  ;;  %v142_v7 = vshrl.u32 %v134_v55, 16 }
  0x28   :  { %v84_v8 = vmul.u32 2246822507, %v76_v53  ;;  %v143_v9 = vshrl.u32 %v135_v57, 16  ;;  %v144_v10 = vshrl.u32 %v136_v58, 16  ;;  %v170_v11 = vxor.u32 %v162_v3, %v154_v59 }
  0x29   :  { %v85_v12 = vmul.u32 2246822507, %v77_v56  ;;  %v145_v13 = vshrl.u32 %v137_v61, 16  ;;  %v148_v14 = vxor.u32 %v140_v62, %v132_v47  ;;  %v163_v15 = vshrl.u32 %v155_v63, 13 }
  0x2a   :  { %v86_v16 = vmul.u32 2246822507, %v78_v60  ;;  %v90_v17 = vshrl.u32 %v82_v1, 13  ;;  %v178_v18 = vmul.u32 3266489909, %v170_v11  ;;  %v91_v20 = vshrl.u32 %v83_v2, 13 }
  0x2b   :  { %v87_v19 = vmul.u32 2246822507, %v79_v0  ;;  %v149_v21 = vxor.u32 %v141_v6, %v133_v54  ;;  %v150_v22 = vxor.u32 %v142_v7, %v134_v55  ;;  %v88_v23 = vmul.u32 2246822507, %v80_v4 }
  0x2c   :  { %v151_v24 = vxor.u32 %v143_v9, %v135_v57  ;;  %v152_v25 = vxor.u32 %v144_v10, %v136_v58  ;;  %v186_v26 = vshrl.u32 %v178_v18, 16  ;;  %v89_v27 = vmul.u32 2246822507, %v81_v5 }
  0x2d   :  { %v153_v28 = vxor.u32 %v145_v13, %v137_v61  ;;  %v156_v29 = vmul.u32 2246822507, %v148_v14  ;;  %v171_v30 = vxor.u32 %v163_v15, %v155_v63  ;;  %v92_v31 = vshrl.u32 %v84_v8, 13 }
  0x2e   :  { %v93_v32 = vshrl.u32 %v85_v12, 13  ;;  %v94_v33 = vshrl.u32 %v86_v16, 13  ;;  %v98_v34 = vxor.u32 %v90_v17, %v82_v1  ;;  %v95_v35 = vshrl.u32 %v87_v19, 13 }
  0x2f   :  { %v99_v36 = vxor.u32 %v91_v20, %v83_v2  ;;  %v157_v37 = vmul.u32 2246822507, %v149_v21  ;;  %v158_v38 = vmul.u32 2246822507, %v150_v22  ;;  %v96_v39 = vshrl.u32 %v88_v23, 13 }
  0x30   :  { %v159_v40 = vmul.u32 2246822507, %v151_v24  ;;  %v160_v41 = vmul.u32 2246822507, %v152_v25  ;;  %v194_v42 = vxor.u32 %v186_v26, %v178_v18  ;;  %v97_v43 = vshrl.u32 %v89_v27, 13 }
  0x31   :  { %v161_v44 = vmul.u32 2246822507, %v153_v28  ;;  %v164_v45 = vshrl.u32 %v156_v29, 13  ;;  %v179_v46 = vmul.u32 3266489909, %v171_v30  ;;  %v100_v47 = vxor.u32 %v92_v31, %v84_v8 }
  0x32   :  { %v101_v48 = vxor.u32 %v93_v32, %v85_v12  ;;  %v102_v49 = vxor.u32 %v94_v33, %v86_v16  ;;  %v106_v50 = vmul.u32 3266489909, %v98_v34  ;;  %v103_v51 = vxor.u32 %v95_v35, %v87_v19 }
  0x33   :  { %v107_v52 = vmul.u32 3266489909, %v99_v36  ;;  %v165_v53 = vshrl.u32 %v157_v37, 13  ;;  %v166_v54 = vshrl.u32 %v158_v38, 13  ;;  %v104_v55 = vxor.u32 %v96_v39, %v88_v23 }
  0x34   :  { %v167_v56 = vshrl.u32 %v159_v40, 13  ;;  %v168_v57 = vshrl.u32 %v160_v41, 13  ;;  %v226_v58 = vshrl.u32 %v194_v42, 9  ;;  %v105_v59 = vxor.u32 %v97_v43, %v89_v27 }
  0x35   :  { %v169_v60 = vshrl.u32 %v161_v44, 13  ;;  %v172_v61 = vxor.u32 %v164_v45, %v156_v29  ;;  %v187_v62 = vshrl.u32 %v179_v46, 16  ;;  %v108_v63 = vmul.u32 3266489909, %v100_v47 }
  0x36   :  { %v109_v0 = vmul.u32 3266489909, %v101_v48  ;;  %v114_v1 = vshrl.u32 %v106_v50, 16  ;;  %v234_v2 = vor.u32 1065353216, %v226_v58  ;;  %v110_v3 = vmul.u32 3266489909, %v102_v49 }
  0x37   :  { %v111_v4 = vmul.u32 3266489909, %v103_v51  ;;  %v173_v5 = vxor.u32 %v165_v53, %v157_v37  ;;  %v174_v6 = vxor.u32 %v166_v54, %v158_v38  ;;  %v112_v7 = vmul.u32 3266489909, %v104_v55 }
  0x38   :  { %v115_v8 = vshrl.u32 %v107_v52, 16  ;;  %v175_v9 = vxor.u32 %v167_v56, %v159_v40  ;;  %v176_v10 = vxor.u32 %v168_v57, %v160_v41  ;;  %v113_v11 = vmul.u32 3266489909, %v105_v59 }
  0x39   :  { %v177_v12 = vxor.u32 %v169_v60, %v161_v44  ;;  %v180_v13 = vmul.u32 3266489909, %v172_v61  ;;  %v195_v14 = vxor.u32 %v187_v62, %v179_v46  ;;  %v116_v15 = vshrl.u32 %v108_v63, 16 }
  0x3a   :  { %v117_v16 = vshrl.u32 %v109_v0, 16  ;;  %v122_v17 = vxor.u32 %v114_v1, %v106_v50  ;;  %v2113_v18 = vadd.f32 -1.0, %v234_v2  ;;  %v118_v19 = vshrl.u32 %v110_v3, 16 }
  0x3b   :  { %v119_v20 = vshrl.u32 %v111_v4, 16  ;;  %v181_v21 = vmul.u32 3266489909, %v173_v5  ;;  %v182_v22 = vmul.u32 3266489909, %v174_v6  ;;  %v123_v23 = vxor.u32 %v115_v8, %v107_v52 }
  0x3c   :  { %v183_v24 = vmul.u32 3266489909, %v175_v9  ;;  %v184_v25 = vmul.u32 3266489909, %v176_v10  ;;  %v2375_v26 = vmul.f32 6.2831855, %v2113_v18  ;;  %v124_v32 = vxor.u32 %v116_v15, %v108_v63 }
  0x3d   :  { %v120_v27 = vshrl.u32 %v112_v7, 16  ;;  %v185_v28 = vmul.u32 3266489909, %v177_v12  ;;  %v188_v29 = vshrl.u32 %v180_v13, 16  ;;  %v227_v30 = vshrl.u32 %v195_v14, 9 }
  0x3e   :  { %v121_v31 = vshrl.u32 %v113_v11, 16  ;;  %v125_v33 = vxor.u32 %v117_v16, %v109_v0  ;;  %v202_v34 = vshrl.u32 %v122_v17, 9  ;;  %v126_v35 = vxor.u32 %v118_v19, %v110_v3 }
  0x3f   :  { %v127_v36 = vxor.u32 %v119_v20, %v111_v4  ;;  %v189_v37 = vshrl.u32 %v181_v21, 16  ;;  %v357_v38 = vand.u32 2139095040, %v2375_v26  ;;  %v190_v39 = vshrl.u32 %v182_v22, 16 }
  0x40   :  { %v191_v40 = vshrl.u32 %v183_v24, 16  ;;  %v192_v41 = vshrl.u32 %v184_v25, 16  ;;  %v203_v42 = vshrl.u32 %v123_v23, 9  ;;  %v193_v43 = vshrl.u32 %v185_v28, 16 }
  0x41   :  { %v196_v44 = vxor.u32 %v188_v29, %v180_v13  ;;  %v235_v45 = vor.u32 1065353216, %v227_v30  ;;  %v358_v46 = vshrl.u32 %v357_v38, 23  ;;  %v128_v47 = vxor.u32 %v120_v27, %v112_v7 }
  0x42   :  { %v129_v48 = vxor.u32 %v121_v31, %v113_v11  ;;  %v204_v49 = vshrl.u32 %v124_v32, 9  ;;  %v210_v50 = vor.u32 1065353216, %v202_v34  ;;  %v197_v51 = vxor.u32 %v189_v37, %v181_v21 }
  0x43   :  { %v205_v52 = vshrl.u32 %v125_v33, 9  ;;  %v206_v53 = vshrl.u32 %v126_v35, 9  ;;  %v2121_v54 = vadd.s32 4294967169, %v358_v46  ;;  %v198_v55 = vxor.u32 %v190_v39, %v182_v22 }
  0x44   :  { %v199_v56 = vxor.u32 %v191_v40, %v183_v24  ;;  %v200_v57 = vxor.u32 %v192_v41, %v184_v25  ;;  %v207_v58 = vshrl.u32 %v127_v36, 9  ;;  %v201_v59 = vxor.u32 %v193_v43, %v185_v28 }
  0x45   :  { %v211_v60 = vor.u32 1065353216, %v203_v42  ;;  %v228_v61 = vshrl.u32 %v196_v44, 9  ;;  %v2114_v62 = vadd.f32 -1.0, %v235_v45  ;;  %v208_v63 = vshrl.u32 %v128_v47, 9 }
  0x46   :  { %v209_v0 = vshrl.u32 %v129_v48, 9  ;;  %v212_v1 = vor.u32 1065353216, %v204_v49  ;;  %v250_v2 = vsub.f32 2.0, %v210_v50  ;;  %v213_v3 = vor.u32 1065353216, %v205_v52 }
  0x47   :  { %v214_v4 = vor.u32 1065353216, %v206_v53  ;;  %v229_v5 = vshrl.u32 %v197_v51, 9  ;;  %v364_v6 = vadd.s32 1, %v2121_v54  ;;  %v215_v7 = vor.u32 1065353216, %v207_v58 }
  0x48   :  { %v230_v8 = vshrl.u32 %v198_v55, 9  ;;  %v231_v9 = vshrl.u32 %v199_v56, 9  ;;  %v232_v10 = vshrl.u32 %v200_v57, 9  ;;  %v233_v11 = vshrl.u32 %v201_v59, 9 }
  0x49   :  { %v236_v12 = vor.u32 1065353216, %v228_v61  ;;  %v251_v13 = vsub.f32 2.0, %v211_v60  ;;  %v2378_v14 = vmul.f32 6.2831855, %v2114_v62  ;;  %v216_v15 = vor.u32 1065353216, %v208_v63 }
  0x4a   :  { %v252_v16 = vsub.f32 2.0, %v212_v1  ;;  %2225 = vlog2.f32 %v250_v2  ;;  %v354_v17 = vand.u32 2147483647, %v2375_v26  ;;  %v217_v18 = vor.u32 1065353216, %v209_v0 }
  0x4b   :  { %3510 = vst [vmem:[#allocation9_spill] sm:$0xff] %v2378_v14  ;;  %v237_v19 = vor.u32 1065353216, %v229_v5  ;;  %vm365_vm0 = vcmp.gt.s32.totalorder %v364_v6, 0  ;;  %v457_v20 = vand.u32 2147483647, %v2378_v14  ;;  %v238_v21 = vor.u32 1065353216, %v230_v8 }
  0x4c   :  { %v239_v22 = vor.u32 1065353216, %v231_v9  ;;  %v240_v23 = vor.u32 1065353216, %v232_v10  ;;  %v253_v24 = vsub.f32 2.0, %v213_v3  ;;  %v241_v25 = vor.u32 1065353216, %v233_v11 }
  0x4d   :  { %v254_v27 = vsub.f32 2.0, %v214_v4  ;;  %v2115_v28 = vadd.f32 -1.0, %v236_v12  ;;  %2227 = vlog2.f32 %v251_v13  ;;  %v361_v29 = vand.u32 8388607, %v354_v17 }
  0x4e   :  { %2229 = vlog2.f32 %v252_v16  ;;  %v366_v30 = vsel %vm365_vm0, %v364_v6, 0  ;;  %v460_v31 = vand.u32 2139095040, %v2378_v14  ;;  %v255_v32 = vsub.f32 2.0, %v215_v7 }
  0x4f   :  { %v256_v33 = vsub.f32 2.0, %v216_v15  ;;  %v464_v34 = vand.u32 8388607, %v457_v20  ;;  %v2116_v35 = vadd.f32 -1.0, %v237_v19  ;;  %v2117_v36 = vadd.f32 -1.0, %v238_v21 }
  0x50   :  { %v2118_v37 = vadd.f32 -1.0, %v239_v22  ;;  %2231 = vlog2.f32 %v253_v24  ;;  %v2119_v38 = vadd.f32 -1.0, %v240_v23  ;;  %v2120_v39 = vadd.f32 -1.0, %v241_v25 }
  0x51   :  { %v2387_v40 = vmul.f32 6.2831855, %v2115_v28  ;;  %v368_v41 = vand.u32 31, %v366_v30  ;;  %v257_v42 = vsub.f32 2.0, %v217_v18  ;;  %2233 = vlog2.f32 %v254_v27 }
  0x52   :  { %v362_v43 = vor.u32 8388608, %v361_v29  ;;  %v461_v44 = vshrl.u32 %v460_v31, 23  ;;  %v465_v45 = vor.u32 8388608, %v464_v34  ;;  %2235 = vlog2.f32 %v255_v32 }
  0x53   :  { %3511 = vst [vmem:[#allocation10_spill] sm:$0xff] %v2387_v40  ;;  %v3480_v46 = vand.u32 2147483647, %v2387_v40  ;;  %v2390_v48 = vmul.f32 6.2831855, %v2116_v35  ;;  %2237 = vlog2.f32 %v256_v33  ;;  %v369_v53 = vsub.s32 32, %v368_v41 }
  0x54   :  { %v2226_v47 = vpop.eup %2225  ;;  %v2392_v49 = vmul.f32 6.2831855, %v2117_v36  ;;  %v2394_v50 = vmul.f32 6.2831855, %v2118_v37  ;;  %v2396_v51 = vmul.f32 6.2831855, %v2119_v38  ;;  %2239 = vlog2.f32 %v257_v42 }
  0x55   :  { %v2398_v52 = vmul.f32 6.2831855, %v2120_v39  ;;  %v2400_v54 = vshll.u32 %v362_v43, 8  ;;  %v2125_v55 = vadd.s32 4294967169, %v461_v44  ;;  %v563_v56 = vand.u32 2139095040, %v2387_v40 }
  0x56   :  { %v267_v58 = vmul.f32 0.6931472, %v2226_v47  ;;  %v2403_v59 = vshrl.u32 %v366_v30, 5  ;;  %v2405_v60 = vshll.u32 %v465_v45, 8  ;;  %v2409_v61 = vand.u32 8388607, %v3480_v46 }
  0x57   :  { %v2228_v57 = vpop.eup %2227  ;;  %v3496_v63 = vmov 683565275   ;;  %v3490_v1 = vmov 2475754826   ;;  %v3488_v4 = vmov 2131351028  }
  0x58   :  { %v2230_v62 = vpop.eup %2229  ;;  %v371_v0 = vshll.u32 %v3496_v63, %v368_v41  ;;  %v372_v2 = vshrl.u32 %v3490_v1, %v369_v53  ;;  %v374_v3 = vshll.u32 %v3490_v1, %v368_v41  ;;  %v375_v5 = vshrl.u32 %v3488_v4, %v369_v53 }
  0x59   :  { %v377_v6 = vshll.u32 %v3488_v4, %v368_v41  ;;  %v3486_v7 = vmov 2102212464   ;;  %v2342_v10 = vmov 920167782   ;;  %v269_v13 = vmul.f32 0.6931472, %v2228_v57 }
  0x5a   :  { %v378_v8 = vshrl.u32 %v3486_v7, %v369_v53  ;;  %v380_v9 = vshll.u32 %v3486_v7, %v368_v41  ;;  %v381_v11 = vshrl.u32 %v2342_v10, %v369_v53  ;;  %v2232_v12 = vpop.eup %2231  ;;  %v383_v15 = vshll.u32 %v2342_v10, %v368_v41 }
  0x5b   :  { %v3507_v16 = vmov 1326507024   ;;  %v467_v19 = vadd.s32 1, %v2125_v55  ;;  %v271_v21 = vmul.f32 0.6931472, %v2230_v62  ;;  %v564_v22 = vshrl.u32 %v563_v56, 23  ;;  %v2234_v25 = vpop.eup %2233 }
  0x5c   :  { %v384_v18 = vshrl.u32 %v3507_v16, %v369_v53  ;;  %v568_v23 = vor.u32 8388608, %v2409_v61  ;;  %v3479_v24 = vand.u32 2147483647, %v2390_v48  ;;  %v2423_v27 = vmul.f32 -2.0, %v267_v58  ;;  %v2236_v34 = vpop.eup %2235 }
  0x5d   :  { %v370_v28 = vshrl.u32 %v3496_v63, %v369_v53  ;;  %v373_v29 = vor.u32 %v372_v2, %v371_v0  ;;  %v376_v30 = vor.u32 %v375_v5, %v374_v3  ;;  %v273_v31 = vmul.f32 0.6931472, %v2232_v12  ;;  %v2430_v37 = vpop.eup %2237 }
  0x5e   :  { %v379_v32 = vor.u32 %v378_v8, %v377_v6  ;;  %v382_v33 = vor.u32 %v381_v11, %v380_v9  ;;  %vm386_vm1 = vcmp.lt.s32.totalorder %v2403_v59, 1  ;;  %v2427_v35 = vmul.f32 -2.0, %v269_v13  ;;  %v2437_v42 = vpop.eup %2239 }
  0x5f   :  { %v385_v36 = vor.u32 %v384_v18, %v383_v15  ;;  %vm389_vm2 = vcmp.lt.s32.totalorder %v2403_v59, 4  ;;  %vm468_vm3 = vcmp.gt.s32.totalorder %v467_v19, 0  ;;  %v2432_v38 = vmul.f32 0.6931472, %v2234_v25 }
  0x60   :  { %vm388_vm4 = vcmp.lt.s32.totalorder %v2403_v59, 3  ;;  %v391_v39 = vsel %vm389_vm2, %v379_v32, 2102212464  ;;  %v2129_v41 = vadd.s32 4294967169, %v564_v22  ;;  %vm387_vm5 = vcmp.lt.s32.totalorder %v2403_v59, 2 }
  0x61   :  { %v390_v43 = vsel %vm386_vm1, %v370_v28, %v373_v29  ;;  %v392_v44 = vsel %vm388_vm4, %v376_v30, %v391_v39  ;;  %v394_v45 = vsel %vm386_vm1, %v373_v29, %v376_v30  ;;  %v2446_v47 = vmul.f32 0.6931472, %v2236_v34 }
  0x62   :  { %v2448_v53 = vmul.f32 -2.0, %v271_v21  ;;  %2241 = vrsqrt.f32 %v2423_v27  ;;  %v395_v55 = vsel %vm389_vm2, %v382_v33, 920167782  ;;  %v2453_v56 = vmul.f32 -2.0, %v273_v31 }
  0x63   :  { %v396_v57 = vsel %vm388_vm4, %v379_v32, %v395_v55  ;;  %v398_v58 = vsel %vm386_vm1, %v376_v30, %v379_v32  ;;  %v399_v62 = vsel %vm389_vm2, %v385_v36, 1326507024  ;;  %v393_v0 = vsel %vm387_vm5, %v390_v43, %v392_v44 }
  0x64   :  { %v397_v2 = vsel %vm387_vm5, %v394_v45, %v396_v57  ;;  %v400_v3 = vsel %vm388_vm4, %v382_v33, %v399_v62  ;;  %v469_v5 = vsel %vm468_vm3, %v467_v19, 0  ;;  %v570_v18 = vadd.s32 1, %v2129_v41 }
  0x65   :  { %v401_v6 = vsel %vm387_vm5, %v398_v58, %v400_v3  ;;  %v2471_v8 = vmul.u32.u64.low %v2400_v54, %v397_v2  ;;  %v2472_v9 = vmul.u32.u64.high %v2400_v54, %v397_v2, %v2471_v8  ;;  %v470_v11 = vshrl.u32 %v469_v5, 5 }
  0x66   :  { %v2476_v12 = vmul.u32.u64.low %v2400_v54, %v401_v6  ;;  %v2477_v13 = vmul.u32.u64.high %v2400_v54, %v401_v6, %v2476_v12  ;;  %v471_v15 = vand.u32 31, %v469_v5  ;;  %v295_v21 = vand.u32 2147483648, %v2423_v27 }
  0x67   :  { %v409_v22 = vmul.u32 %v2400_v54, %v393_v0  ;;  %vm489_vm6 = vcmp.lt.s32.totalorder %v470_v11, 1  ;;  %vm490_vm7 = vcmp.lt.s32.totalorder %v470_v11, 2  ;;  %vm492_vm8 = vcmp.lt.s32.totalorder %v470_v11, 4 }
  0x68   :  { %v472_v59 = vsub.s32 32, %v471_v15  ;;  %v474_v19 = vshll.u32 %v3496_v63, %v471_v15  ;;  %v477_v25 = vshll.u32 %v3490_v1, %v471_v15  ;;  %v412_v28 = vadd.s32 1, %v2472_v9 }
  0x69   :  { %v480_v29 = vshll.u32 %v3488_v4, %v471_v15  ;;  %v483_v30 = vshll.u32 %v3486_v7, %v471_v15  ;;  %vm571_vm9 = vcmp.gt.s32.totalorder %v570_v18, 0  ;;  %vm411_vm10 = vc.u32 %v2477_v13, %v2471_v8 }
  0x6a   :  { %v473_v54 = vshrl.u32 %v3496_v63, %v472_v59  ;;  %v475_v31 = vshrl.u32 %v3490_v1, %v472_v59  ;;  %v486_v32 = vshll.u32 %v2342_v10, %v471_v15  ;;  %v413_v33 = vsel %vm411_vm10, %v412_v28, %v2472_v9 }
  0x6b   :  { %v478_v34 = vshrl.u32 %v3488_v4, %v472_v59  ;;  %v481_v36 = vshrl.u32 %v3486_v7, %v472_v59  ;;  %v484_v39 = vshrl.u32 %v2342_v10, %v472_v59  ;;  %v414_v43 = vadd.s32 %v413_v33, %v409_v22 }
  0x6c   :  { %v2495_v41 = vpop.eup %2241  ;;  %v476_v44 = vor.u32 %v475_v31, %v474_v19  ;;  %v487_v45 = vshrl.u32 %v3507_v16, %v472_v59  ;;  %v572_v55 = vsel %vm571_vm9, %v570_v18, 0  ;;  %vm491_vm11 = vcmp.lt.s32.totalorder %v470_v11, 3 }
  0x6d   :  { %v479_v57 = vor.u32 %v478_v34, %v477_v25  ;;  %v482_v58 = vor.u32 %v481_v36, %v480_v29  ;;  %v485_v62 = vor.u32 %v484_v39, %v483_v30  ;;  %v415_v0 = vadd.s32 536870912, %v414_v43 }
  0x6e   :  { %v488_v2 = vor.u32 %v487_v45, %v486_v32  ;;  %v493_v3 = vsel %vm489_vm6, %v473_v54, %v476_v44  ;;  %v574_v5 = vand.u32 31, %v572_v55  ;;  %v279_v25 = vmul.f32 0.6931472, %v2430_v37 }
  0x6f   :  { %v494_v6 = vsel %vm492_vm8, %v482_v58, 2102212464  ;;  %v497_v9 = vsel %vm489_vm6, %v476_v44, %v479_v57  ;;  %v498_v12 = vsel %vm492_vm8, %v485_v62, 920167782  ;;  %v501_v15 = vsel %vm489_vm6, %v479_v57, %v482_v58 }
  0x70   :  { %v2503_v22 = vshrl.u32 %v415_v0, 30  ;;  %v495_v18 = vsel %vm491_vm11, %v479_v57, %v494_v6  ;;  %v499_v59 = vsel %vm491_vm11, %v482_v58, %v498_v12  ;;  %v502_v19 = vsel %vm492_vm8, %v488_v2, 1326507024 }
  0x71   :  { %v500_v28 = vsel %vm490_vm7, %v497_v9, %v499_v59  ;;  %v503_v29 = vsel %vm491_vm11, %v485_v62, %v502_v19  ;;  %v575_v30 = vsub.s32 32, %v574_v5  ;;  %v2509_v54 = vmul.f32 -2.0, %v2432_v38 }
  0x72   :  { %v417_v31 = vshll.u32 %v2503_v22, 30  ;;  %v496_v32 = vsel %vm490_vm7, %v493_v3, %v495_v18  ;;  %v504_v33 = vsel %vm490_vm7, %v501_v15, %v503_v29  ;;  %v281_v44 = vmul.f32 0.6931472, %v2437_v42 }
  0x73   :  { %v2515_v34 = vmul.u32.u64.low %v2405_v60, %v504_v33  ;;  %v2516_v36 = vmul.u32.u64.high %v2405_v60, %v504_v33, %v2515_v34  ;;  %v2519_v39 = vmul.u32.u64.low %v2405_v60, %v500_v28  ;;  %v2520_v37 = vmul.u32.u64.high %v2405_v60, %v500_v28, %v2519_v39 }
  0x74   :  { %v2525_v38 = vmul.f32 -2.0, %v2446_v47  ;;  %2243 = vrsqrt.f32 %v2427_v35  ;;  %v2528_v45 = vsub.s32 %v414_v43, %v417_v31  ;;  %v577_v11 = vshll.u32 %v3496_v63, %v574_v5 }
  0x75   :  { %v578_v57 = vshrl.u32 %v3490_v1, %v575_v30  ;;  %v580_v58 = vshll.u32 %v3490_v1, %v574_v5  ;;  %v581_v62 = vshrl.u32 %v3488_v4, %v575_v30  ;;  %v302_v0 = vand.u32 2147483648, %v2427_v35 }
  0x76   :  { %v420_v2 = vsub.s32 0, %v2528_v45  ;;  %v512_v42 = vmul.u32 %v2405_v60, %v496_v32  ;;  %v2537_v47 = vshrl.u32 %v572_v55, 5  ;;  %vm514_vm12 = vc.u32 %v2516_v36, %v2519_v39 }
  0x77   :  { %v515_v43 = vadd.s32 1, %v2520_v37  ;;  %v583_v3 = vshll.u32 %v3488_v4, %v574_v5  ;;  %v584_v6 = vshrl.u32 %v3486_v7, %v575_v30  ;;  %v2544_v9 = vmul.f32 -2.0, %v279_v25 }
  0x78   :  { %2245 = vrsqrt.f32 %v2448_v53  ;;  %v2122_v12 = vmin.u32 %v420_v2, %v2528_v45  ;;  %v576_v15 = vshrl.u32 %v3496_v63, %v575_v30  ;;  %v579_v55 = vor.u32 %v578_v57, %v577_v11 }
  0x79   :  { %v516_v60 = vsel %vm514_vm12, %v515_v43, %v2520_v37  ;;  %v582_v18 = vor.u32 %v581_v62, %v580_v58  ;;  %v586_v59 = vshll.u32 %v3486_v7, %v574_v5  ;;  %v587_v29 = vshrl.u32 %v2342_v10, %v575_v30 }
  0x7a   :  { %v422_v19 = vclz %v2122_v12  ;;  %v517_v28 = vadd.s32 %v516_v60, %v512_v42  ;;  %v589_v31 = vshll.u32 %v2342_v10, %v574_v5  ;;  %v585_v25 = vor.u32 %v584_v6, %v583_v3 }
  0x7b   :  { %v590_v32 = vshrl.u32 %v3507_v16, %v575_v30  ;;  %vm592_vm13 = vcmp.lt.s32.totalorder %v2537_v47, 1  ;;  %vm594_vm14 = vcmp.lt.s32.totalorder %v2537_v47, 3  ;;  %v588_v37 = vor.u32 %v587_v29, %v586_v59 }
  0x7c   :  { %v2123_v33 = vadd.s32 4294967294, %v422_v19  ;;  %v518_v34 = vadd.s32 536870912, %v517_v28  ;;  %vm595_vm15 = vcmp.lt.s32.totalorder %v2537_v47, 4  ;;  %2247 = vrsqrt.f32 %v2453_v56 }
  0x7d   :  { %v591_v11 = vor.u32 %v590_v32, %v589_v31  ;;  %vm593_vm0 = vcmp.lt.s32.totalorder %v2537_v47, 2  ;;  %v597_v5 = vsel %vm595_vm15, %v585_v25, 2102212464  ;;  %vm292_vm1 = vcmp.eq.f32.partialorder %v2423_v27, inf }
  0x7e   :  { %v2244_v57 = vpop.eup %2243  ;;  %vm2124_vm2 = vcmp.lt.s32.totalorder %v2123_v33, 0  ;;  %v2562_v30 = vshrl.u32 %v518_v34, 30  ;;  %v600_v58 = vsel %vm592_vm13, %v579_v55, %v582_v18  ;;  %v601_v62 = vsel %vm595_vm15, %v588_v37, 920167782 }
  0x7f   :  { %v2568_v2 = vmul.f32 -2.0, %v281_v44  ;;  %2249 = vrsqrt.f32 %v2509_v54  ;;  %v2571_v42 = vsel %vm2124_vm2, 0, %v2123_v33  ;;  %v602_v43 = vsel %vm594_vm14, %v585_v25, %v601_v62 }
  0x80   :  { %vm299_vm3 = vcmp.eq.f32.partialorder %v2427_v35, inf  ;;  %2251 = vrsqrt.f32 %v2525_v38  ;;  %v520_v3 = vshll.u32 %v2562_v30, 30  ;;  %v596_v6 = vsel %vm592_vm13, %v576_v15, %v579_v55 }
  0x81   :  { %3512 = vst [vmem:[#allocation11_spill] sm:$0xff] %v2568_v2  ;;  %v604_v44 = vsel %vm592_vm13, %v582_v18, %v585_v25  ;;  %v598_v12 = vsel %vm594_vm14, %v582_v18, %v597_v5  ;;  %v603_v60 = vsel %vm593_vm0, %v600_v58, %v602_v43  ;;  %v605_v59 = vsel %vm595_vm15, %v591_v11, 1326507024 }
  0x82   :  { %v608_v19 = vshll.u32 %v568_v23, 8  ;;  %v2246_v29 = vpop.eup %2245  ;;  %vm294_vm4 = vcmp.eq.f32.partialorder %v2423_v27, 0.0  ;;  %v309_v15 = vand.u32 2147483648, %v2448_v53  ;;  %v430_v55 = vsub.s32 4294967266, %v2571_v42 }
  0x83   :  { %v2593_v31 = vsub.s32 %v517_v28, %v520_v3  ;;  %v606_v18 = vsel %vm594_vm14, %v588_v37, %v605_v59  ;;  %vm301_vm5 = vcmp.eq.f32.partialorder %v2427_v35, 0.0  ;;  %v316_v25 = vand.u32 2147483648, %v2453_v56 }
  0x84   :  { %v607_v61 = vsel %vm593_vm0, %v604_v44, %v606_v18  ;;  %v2601_v23 = vmul.u32.u64.low %v608_v19, %v603_v60  ;;  %v2602_v32 = vmul.u32.u64.high %v608_v19, %v603_v60, %v2601_v23  ;;  %v291_v33 = vmul.f32 %v2495_v41, %v2423_v27 }
  0x85   :  { %2253 = vrsqrt.f32 %v2544_v9  ;;  %v523_v28 = vsub.s32 0, %v2593_v31  ;;  %v599_v34 = vsel %vm593_vm0, %v596_v6, %v598_v12  ;;  %vm306_vm6 = vcmp.eq.f32.partialorder %v2448_v53, inf }
  0x86   :  { %vm313_vm7 = vcmp.eq.f32.partialorder %v2453_v56, inf  ;;  %v410_v37 = vadd.s32 %v2471_v8, %v2477_v13  ;;  %v426_v11 = vsub.s32 32, %v2571_v42  ;;  %vm320_vm8 = vcmp.eq.f32.partialorder %v2509_v54, inf  ;;  %v2248_v43 = vpop.eup %2247 }
  0x87   :  { %v2616_v5 = vmul.u32.u64.low %v608_v19, %v607_v61  ;;  %v2617_v58 = vmul.u32.u64.high %v608_v19, %v607_v61, %v2616_v5  ;;  %v323_v41 = vand.u32 2147483648, %v2509_v54  ;;  %v431_v62 = vadd.s32 127, %v430_v55 }
  0x88   :  { %v2126_v47 = vmin.u32 %v523_v28, %v2593_v31  ;;  %v298_v3 = vmul.f32 %v2244_v57, %v2427_v35  ;;  %vm327_vm9 = vcmp.eq.f32.partialorder %v2525_v38, inf  ;;  %v615_v6 = vmul.u32 %v608_v19, %v599_v34 }
  0x89   :  { %v618_v8 = vadd.s32 1, %v2602_v32  ;;  %v330_v13 = vand.u32 2147483648, %v2525_v38  ;;  %v337_v44 = vand.u32 2147483648, %v2544_v9  ;;  %v666_v60 = vand.u32 2139095040, %v2390_v48  ;;  %v2250_v59 = vpop.eup %2249 }
  0x8a   :  { %v525_v12 = vclz %v2126_v47  ;;  %v293_v55 = vsel %vm292_vm1, %v2423_v27, %v291_v33  ;;  %vm308_vm10 = vcmp.eq.f32.partialorder %v2448_v53, 0.0  ;;  %vm315_vm11 = vcmp.eq.f32.partialorder %v2453_v56, 0.0  ;;  %v2252_v18 = vpop.eup %2251 }
  0x8b   :  { %vm322_vm12 = vcmp.eq.f32.partialorder %v2509_v54, 0.0  ;;  %v427_v57 = vshll.u32 %v2528_v45, %v2571_v42  ;;  %v428_v19 = vshrl.u32 %v410_v37, %v426_v11  ;;  %vm617_vm13 = vc.u32 %v2617_v58, %v2601_v23 }
  0x8c   :  { %vm329_vm14 = vcmp.eq.f32.partialorder %v2525_v38, 0.0  ;;  %vm334_vm15 = vcmp.eq.f32.partialorder %v2544_v9, inf  ;;  %v432_v61 = vshll.u32 %v431_v62, 23  ;;  %v2127_v33 = vadd.s32 4294967294, %v525_v12 }
  0x8d   :  { %v619_v28 = vsel %vm617_vm13, %v618_v8, %v2602_v32  ;;  %v667_v34 = vshrl.u32 %v666_v60, 23  ;;  %v300_v5 = vsel %vm299_vm3, %v2427_v35, %v298_v3  ;;  %v305_v45 = vmul.f32 %v2246_v29, %v2448_v53 }
  0x8e   :  { %2255 = vrsqrt.f32 %v2568_v2  ;;  %v620_v42 = vadd.s32 %v619_v28, %v615_v6  ;;  %v312_v37 = vmul.f32 %v2248_v43, %v2453_v56  ;;  %v319_v11 = vmul.f32 %v2250_v59, %v2509_v54 }
  0x8f   :  { %vm2128_vm0 = vcmp.lt.s32.totalorder %v2127_v33, 0  ;;  %v2133_v47 = vadd.s32 4294967169, %v667_v34  ;;  %v2652_v32 = vsel %vm294_vm4, %v295_v21, %v293_v55  ;;  %v326_v62 = vmul.f32 %v2252_v18, %v2525_v38  ;;  %v2254_v29 = vpop.eup %2253 }
  0x90   :  { %v528_v3 = vsel %vm2128_vm0, 0, %v2127_v33  ;;  %v621_v8 = vadd.s32 536870912, %v620_v42  ;;  %v2659_v43 = vsel %vm301_vm5, %v302_v0, %v300_v5  ;;  %v429_v6 = vor.u32 %v428_v19, %v427_v57 }
  0x91   :  { %v433_v12 = vor.u32 4788187, %v432_v61  ;;  %v533_v60 = vsub.s32 4294967266, %v528_v3  ;;  %v513_v59 = vadd.s32 %v2519_v39, %v2516_v36  ;;  %v529_v27 = vsub.s32 32, %v528_v3 }
  0x92   :  { %v2663_v21 = vshrl.u32 %v621_v8, 30  ;;  %v673_v55 = vadd.s32 1, %v2133_v47  ;;  %v307_v18 = vsel %vm306_vm6, %v2448_v53, %v305_v45  ;;  %v314_v35 = vsel %vm313_vm7, %v2453_v56, %v312_v37 }
  0x93   :  { %v321_v0 = vsel %vm320_vm8, %v2509_v54, %v319_v11  ;;  %v534_v57 = vadd.s32 127, %v533_v60  ;;  %v328_v36 = vsel %vm327_vm9, %v2525_v38, %v326_v62  ;;  %v333_v39 = vmul.f32 %v2254_v29, %v2544_v9 }
  0x94   :  { %v623_v19 = vshll.u32 %v2663_v21, 30  ;;  %vm674_vm1 = vcmp.gt.s32.totalorder %v673_v55, 0  ;;  %v434_v61 = vand.u32 2147483647, %v433_v12  ;;  %v436_v33 = vcvt.s32.f32 %v429_v6 }
  0x95   :  { %v670_v28 = vand.u32 8388607, %v3479_v24  ;;  %v675_v34 = vsel %vm674_vm1, %v673_v55, 0  ;;  %vm356_vm2 = vcmp.lt.s32.totalorder %v2375_v26, 0  ;;  %v530_v5 = vshll.u32 %v2593_v31, %v528_v3 }
  0x96   :  { %v531_v45 = vshrl.u32 %v513_v59, %v529_v27  ;;  %v2683_v37 = vsub.s32 %v620_v42, %v623_v19  ;;  %v677_v11 = vand.u32 31, %v675_v34  ;;  %v2689_v47 = vsel %vm308_vm10, %v309_v15, %v307_v18 }
  0x97   :  { %v2695_v62 = vsel %vm315_vm11, %v316_v25, %v314_v35  ;;  %v2701_v31 = vsel %vm322_vm12, %v323_v41, %v321_v0  ;;  %v535_v42 = vshll.u32 %v534_v57, 23  ;;  %v2709_v53 = vsel %vm329_vm14, %v330_v13, %v328_v36 }
  0x98   :  { %v2703_v3 = vpop.eup %2255  ;;  %3514 = vst [vmem:[#allocation13_spill] sm:$0xff] %v2709_v53  ;;  %v2714_v56 = vsel %vm334_vm15, %v2544_v9, %v333_v39  ;;  %v626_v15 = vsub.s32 0, %v2683_v37  ;;  %v678_v25 = vsub.s32 32, %v677_v11  ;;  %v437_v54 = vmul.f32 %v436_v33, %v434_v61 }
  0x99   :  { %3513 = vst [vmem:[#allocation12_spill] sm:$0xff] %v2703_v3  ;;  %v440_v41 = vsub.s32 4, %v2503_v22  ;;  %v543_v8 = vsub.s32 4, %v2562_v30  ;;  %v616_v29 = vadd.s32 %v2601_v23, %v2617_v58  ;;  %v532_v6 = vor.u32 %v531_v45, %v530_v5 }
  0x9a   :  { %v2130_v38 = vmin.u32 %v626_v15, %v2683_v37  ;;  %v671_v13 = vor.u32 8388608, %v670_v28  ;;  %v769_v12 = vand.u32 2139095040, %v2392_v49  ;;  %v536_v60 = vor.u32 4788187, %v535_v42 }
  0x9b   :  { %v680_v59 = vshll.u32 %v3496_v63, %v677_v11  ;;  %v683_v27 = vshll.u32 %v3490_v1, %v677_v11  ;;  %v689_v55 = vshll.u32 %v3486_v7, %v677_v11  ;;  %v681_v35 = vshrl.u32 %v3490_v1, %v678_v25 }
  0x9c   :  { %v628_v18 = vclz %v2130_v38  ;;  %v684_v0 = vshrl.u32 %v3488_v4, %v678_v25  ;;  %v690_v23 = vshrl.u32 %v2342_v10, %v678_v25  ;;  %v438_v58 = vxor.u32 2147483648, %v437_v54 }
  0x9d   :  { %v676_v57 = vshrl.u32 %v675_v34, 5  ;;  %v686_v36 = vshll.u32 %v3488_v4, %v677_v11  ;;  %v687_v39 = vshrl.u32 %v3486_v7, %v678_v25  ;;  %v692_v61 = vshll.u32 %v2342_v10, %v677_v11 }
  0x9e   :  { %v2131_v19 = vadd.s32 4294967294, %v628_v18  ;;  %v693_v33 = vshrl.u32 %v3507_v16, %v678_v25  ;;  %v770_v28 = vshrl.u32 %v769_v12, 23  ;;  %vm2735_vm3 = vcmp.le.f32.partialorder %v354_v17, 0.7853982 }
  0x9f   :  { %v537_v45 = vand.u32 2147483647, %v536_v60  ;;  %v539_v42 = vcvt.s32.f32 %v532_v6  ;;  %v679_v34 = vshrl.u32 %v3496_v63, %v678_v25  ;;  %v2740_v15 = vshll.u32 %v671_v13, 8 }
  0xa0   :  { %vm459_vm4 = vcmp.lt.s32.totalorder %v2378_v14, 0  ;;  %vm2132_vm5 = vcmp.lt.s32.totalorder %v2131_v19, 0  ;;  %v682_v38 = vor.u32 %v681_v35, %v680_v59  ;;  %v685_v11 = vor.u32 %v684_v0, %v683_v27 }
  0xa1   :  { %v691_v18 = vor.u32 %v690_v23, %v689_v55  ;;  %vm336_vm6 = vcmp.eq.f32.partialorder %v2544_v9, 0.0  ;;  %v439_v17 = vsel %vm356_vm2, %v438_v58, %v437_v54  ;;  %v631_v12 = vsel %vm2132_vm5, 0, %v2131_v19 }
  0xa2   :  { %v688_v24 = vor.u32 %v687_v39, %v686_v36  ;;  %vm695_vm7 = vcmp.lt.s32.totalorder %v676_v57, 1  ;;  %v632_v60 = vsub.s32 32, %v631_v12  ;;  %v694_v6 = vor.u32 %v693_v33, %v692_v61 }
  0xa3   :  { %vm697_vm8 = vcmp.lt.s32.totalorder %v676_v57, 3  ;;  %v2137_v25 = vadd.s32 4294967169, %v770_v28  ;;  %v540_v13 = vmul.f32 %v539_v42, %v537_v45  ;;  %v636_v46 = vsub.s32 4294967266, %v631_v12 }
  0xa4   :  { %vm696_vm9 = vcmp.lt.s32.totalorder %v676_v57, 2  ;;  %vm698_vm10 = vcmp.lt.s32.totalorder %v676_v57, 4  ;;  %vm2748_vm11 = vcmp.le.f32.partialorder %v457_v20, 0.7853982  ;;  %v699_v27 = vsel %vm695_vm7, %v679_v34, %v682_v38 }
  0xa5   :  { %v700_v54 = vsel %vm698_vm10, %v688_v24, 2102212464  ;;  %v703_v55 = vsel %vm695_vm7, %v682_v38, %v685_v11  ;;  %v704_v35 = vsel %vm698_vm10, %v691_v18, 920167782  ;;  %v637_v0 = vadd.s32 127, %v636_v46 }
  0xa6   :  { %v701_v23 = vsel %vm697_vm8, %v685_v11, %v700_v54  ;;  %v705_v58 = vsel %vm697_vm8, %v688_v24, %v704_v35  ;;  %v707_v36 = vsel %vm695_vm7, %v685_v11, %v688_v24  ;;  %v633_v39 = vshll.u32 %v2683_v37, %v631_v12 }
  0xa7   :  { %v634_v19 = vshrl.u32 %v616_v29, %v632_v60  ;;  %v706_v20 = vsel %vm696_vm9, %v703_v55, %v705_v58  ;;  %v708_v61 = vsel %vm698_vm10, %v694_v6, 1326507024  ;;  %v638_v33 = vshll.u32 %v637_v0, 23 }
  0xa8   :  { %v709_v28 = vsel %vm697_vm8, %v691_v18, %v708_v61  ;;  %v2761_v45 = vmul.u32.u64.low %v2740_v15, %v706_v20  ;;  %v2762_v42 = vmul.u32.u64.high %v2740_v15, %v706_v20, %v2761_v45  ;;  %v541_v46 = vxor.u32 2147483648, %v540_v13 }
  0xa9   :  { %v702_v34 = vsel %vm696_vm9, %v699_v27, %v701_v23  ;;  %v710_v38 = vsel %vm696_vm9, %v707_v36, %v709_v28  ;;  %v776_v24 = vadd.s32 1, %v2137_v25  ;;  %v441_v37 = vsel %vm356_vm2, %v440_v41, %v2503_v22 }
  0xaa   :  { %v544_v29 = vsel %vm459_vm4, %v543_v8, %v2562_v30  ;;  %v2778_v11 = vmul.u32.u64.low %v2740_v15, %v710_v38  ;;  %v2779_v18 = vmul.u32.u64.high %v2740_v15, %v710_v38, %v2778_v11  ;;  %v442_v57 = vsel %vm2735_vm3, %v2375_v26, %v439_v17 }
  0xab   :  { %v635_v12 = vor.u32 %v634_v19, %v633_v39  ;;  %v3492_v60 = vand.u32 2147483647, %v2392_v49  ;;  %vm777_vm12 = vcmp.gt.s32.totalorder %v776_v24, 0  ;;  %v639_v6 = vor.u32 4788187, %v638_v33 }
  0xac   :  { %v718_v22 = vmul.u32 %v2740_v15, %v702_v34  ;;  %v721_v41 = vadd.s32 1, %v2762_v42  ;;  %v778_v25 = vsel %vm777_vm12, %v776_v24, 0  ;;  %v2792_v30 = vsel %vm336_vm6, %v337_v44, %v2714_v56 }
  0xad   :  { %3519 = vst [vmem:[#allocation14_spill] sm:$0xff] %v2792_v30  ;;  %v2796_v8 = vsel %vm2735_vm3, 0, %v441_v37  ;;  %v542_v17 = vsel %vm459_vm4, %v541_v46, %v540_v13  ;;  %v780_v27 = vand.u32 31, %v778_v25  ;;  %2257 = vcosq.f32 %v442_v57 }
  0xae   :  { %v2801_v15 = vand.u32 3, %v2796_v8  ;;  %v2805_v54 = vsel %vm2748_vm11, 0, %v544_v29  ;;  %vm720_vm13 = vc.u32 %v2779_v18, %v2761_v45  ;;  %2259 = vsinq.f32 %v442_v57 }
  0xaf   :  { %v722_v9 = vsel %vm720_vm13, %v721_v41, %v2762_v42  ;;  %v773_v44 = vand.u32 8388607, %v3492_v60  ;;  %v781_v56 = vsub.s32 32, %v780_v27  ;;  %v545_v5 = vsel %vm2748_vm11, %v2378_v14, %v542_v17 }
  0xb0   :  { %v640_v13 = vand.u32 2147483647, %v639_v6  ;;  %v642_v55 = vcvt.s32.f32 %v635_v12  ;;  %v723_v35 = vadd.s32 %v722_v9, %v718_v22  ;;  %v783_v0 = vshll.u32 %v3496_v63, %v780_v27 }
  0xb1   :  { %v784_v23 = vshrl.u32 %v3490_v1, %v781_v56  ;;  %v786_v58 = vshll.u32 %v3490_v1, %v780_v27  ;;  %v787_v36 = vshrl.u32 %v3488_v4, %v781_v56  ;;  %v2820_v39 = vand.u32 3, %v2805_v54 }
  0xb2   :  { %vm562_vm14 = vcmp.lt.s32.totalorder %v2387_v40, 0  ;;  %v724_v19 = vadd.s32 536870912, %v723_v35  ;;  %v779_v20 = vshrl.u32 %v778_v25, 5  ;;  %v789_v59 = vshll.u32 %v3488_v4, %v780_v27 }
  0xb3   :  { %2261 = vcosq.f32 %v545_v5  ;;  %v646_v61 = vsub.s32 4, %v2663_v21  ;;  %v774_v33 = vor.u32 8388608, %v773_v44  ;;  %v790_v28 = vshrl.u32 %v3486_v7, %v781_v56 }
  0xb4   :  { %v643_v42 = vmul.f32 %v642_v55, %v640_v13  ;;  %v2826_v46 = vshrl.u32 %v724_v19, 30  ;;  %v792_v34 = vshll.u32 %v3486_v7, %v780_v27  ;;  %v793_v38 = vshrl.u32 %v2342_v10, %v781_v56 }
  0xb5   :  { %vm449_vm15 = vcmp.eq.s32.totalorder %v2801_v15, 0  ;;  %v785_v24 = vor.u32 %v784_v23, %v783_v0  ;;  %v788_v37 = vor.u32 %v787_v36, %v786_v58  ;;  %v795_v29 = vshll.u32 %v2342_v10, %v780_v27 }
  0xb6   :  { %v796_v11 = vshrl.u32 %v3507_v16, %v781_v56  ;;  %v726_v57 = vshll.u32 %v2826_v46, 30  ;;  %v791_v12 = vor.u32 %v790_v28, %v789_v59  ;;  %v794_v6 = vor.u32 %v793_v38, %v792_v34 }
  0xb7   :  { %vm798_vm0 = vcmp.lt.s32.totalorder %v779_v20, 1  ;;  %2263 = vsinq.f32 %v545_v5  ;;  %v3520_v22 = vand.u32 2147483647, %v2387_v40  ;;  %vm800_vm2 = vcmp.lt.s32.totalorder %v779_v20, 3  ;;  %v2840_v17 = vpop.eup %2257 }
  0xb8   :  { %v797_v25 = vor.u32 %v796_v11, %v795_v29  ;;  %vm801_vm3 = vcmp.lt.s32.totalorder %v779_v20, 4  ;;  %vm448_vm4 = vcmp.lt.s32.totalorder %v2801_v15, 2  ;;  %v2843_v27 = vsub.s32 %v723_v35, %v726_v57  ;;  %v2846_v5 = vpop.eup %2259 }
  0xb9   :  { %vm2836_vm1 = vcmp.le.f32.partialorder %v3520_v22, 0.7853982  ;;  %v782_v9 = vshrl.u32 %v3496_v63, %v781_v56  ;;  %vm799_vm5 = vcmp.lt.s32.totalorder %v779_v20, 2  ;;  %v814_v44 = vshll.u32 %v774_v33, 8 }
  0xba   :  { %v803_v13 = vsel %vm801_vm3, %v791_v12, 2102212464  ;;  %v806_v55 = vsel %vm798_vm0, %v785_v24, %v788_v37  ;;  %v807_v0 = vsel %vm801_vm3, %v794_v6, 920167782  ;;  %v872_v23 = vand.u32 2139095040, %v2394_v50 }
  0xbb   :  { %vm452_vm6 = vcmp.eq.s32.totalorder %v2801_v15, 2  ;;  %v644_v58 = vxor.u32 2147483648, %v643_v42  ;;  %v729_v35 = vsub.s32 0, %v2843_v27  ;;  %v808_v36 = vsel %vm800_vm2, %v791_v12, %v807_v0 }
  0xbc   :  { %v647_v56 = vsel %vm562_vm14, %v646_v61, %v2663_v21  ;;  %v809_v19 = vsel %vm799_vm5, %v806_v55, %v808_v36  ;;  %v810_v59 = vsel %vm798_vm0, %v788_v37, %v791_v12  ;;  %v811_v33 = vsel %vm801_vm3, %v797_v25, 1326507024 }
  0xbd   :  { %v3483_v28 = vxor.u32 2147483648, %v2840_v17  ;;  %vm552_vm7 = vcmp.eq.s32.totalorder %v2820_v39, 0  ;;  %v2134_v34 = vmin.u32 %v729_v35, %v2843_v27  ;;  %v802_v38 = vsel %vm798_vm0, %v782_v9, %v785_v24  ;;  %v2866_v11 = vpop.eup %2261 }
  0xbe   :  { %v804_v29 = vsel %vm800_vm2, %v788_v37, %v803_v13  ;;  %v812_v21 = vsel %vm800_vm2, %v794_v6, %v811_v33  ;;  %v2869_v61 = vmul.u32.u64.low %v814_v44, %v809_v19  ;;  %v2870_v57 = vmul.u32.u64.high %v814_v44, %v809_v19, %v2869_v61 }
  0xbf   :  { %v873_v12 = vshrl.u32 %v872_v23, 23  ;;  %v3484_v22 = vxor.u32 2147483648, %v2846_v5  ;;  %v645_v25 = vsel %vm562_vm14, %v644_v58, %v643_v42  ;;  %v731_v55 = vclz %v2134_v34 }
  0xc0   :  { %v813_v0 = vsel %vm799_vm5, %v810_v59, %v812_v21  ;;  %v805_v24 = vsel %vm799_vm5, %v802_v38, %v804_v29  ;;  %v454_v42 = vsel %vm452_vm6, %v3483_v28, %v2846_v5  ;;  %v2893_v20 = vsel %vm2836_vm1, 0, %v647_v56 }
  0xc1   :  { %v2878_v37 = vmul.u32.u64.low %v814_v44, %v813_v0  ;;  %v2879_v9 = vmul.u32.u64.high %v814_v44, %v813_v0, %v2878_v37  ;;  %v2141_v13 = vadd.s32 4294967169, %v873_v12  ;;  %v451_v6 = vsel %vm449_vm15, %v2840_v17, %v3484_v22  ;;  %v2895_v58 = vpop.eup %2263 }
  0xc2   :  { %v2135_v23 = vadd.s32 4294967294, %v731_v55  ;;  %vm555_vm8 = vcmp.eq.s32.totalorder %v2820_v39, 2  ;;  %v2899_v35 = vand.u32 3, %v2893_v20  ;;  %v824_v36 = vadd.s32 1, %v2870_v57 }
  0xc3   :  { %v879_v19 = vadd.s32 1, %v2141_v13  ;;  %vm551_vm9 = vcmp.lt.s32.totalorder %v2820_v39, 2  ;;  %v648_v59 = vsel %vm2836_vm1, %v2387_v40, %v645_v25  ;;  %v719_v56 = vadd.s32 %v2761_v45, %v2779_v18 }
  0xc4   :  { %vm2136_vm10 = vcmp.lt.s32.totalorder %v2135_v23, 0  ;;  %v821_v33 = vmul.u32 %v814_v44, %v805_v24  ;;  %v455_v34 = vsel %vm448_vm4, %v451_v6, %v454_v42  ;;  %vm823_vm11 = vc.u32 %v2879_v9, %v2869_v61 }
  0xc5   :  { %v734_v38 = vsel %vm2136_vm10, 0, %v2135_v23  ;;  %v3485_v29 = vand.u32 2147483647, %v2394_v50  ;;  %vm446_vm12 = vweird.f32 %v2375_v26  ;;  %v3481_v21 = vxor.u32 2147483648, %v2866_v11 }
  0xc6   :  { %v735_v41 = vsub.s32 32, %v734_v38  ;;  %v736_v12 = vshll.u32 %v2843_v27, %v734_v38  ;;  %v739_v25 = vsub.s32 4294967266, %v734_v38  ;;  %v3482_v45 = vxor.u32 2147483648, %v2895_v58 }
  0xc7   :  { %2265 = vcosq.f32 %v648_v59  ;;  %v825_v18 = vsel %vm823_vm11, %v824_v36, %v2870_v57  ;;  %vm880_vm13 = vcmp.gt.s32.totalorder %v879_v19, 0  ;;  %v557_v27 = vsel %vm555_vm8, %v3481_v21, %v2895_v58 }
  0xc8   :  { %v737_v15 = vshrl.u32 %v719_v56, %v735_v41  ;;  %v740_v44 = vadd.s32 127, %v739_v25  ;;  %v826_v55 = vadd.s32 %v825_v18, %v821_v33  ;;  %v881_v0 = vsel %vm880_vm13, %v879_v19, 0 }
  0xc9   :  { %v554_v24 = vsel %vm552_vm7, %v2866_v11, %v3482_v45  ;;  %2267 = vsinq.f32 %v648_v59  ;;  %vm665_vm14 = vcmp.lt.s32.totalorder %v2390_v48, 0  ;;  %v883_v57 = vand.u32 31, %v881_v0 }
  0xca   :  { %v738_v37 = vor.u32 %v737_v15, %v736_v12  ;;  %v741_v13 = vshll.u32 %v740_v44, 23  ;;  %v749_v6 = vsub.s32 4, %v2826_v46  ;;  %v827_v42 = vadd.s32 536870912, %v826_v55 }
  0xcb   :  { %v876_v23 = vand.u32 8388607, %v3485_v29  ;;  %v2932_v36 = vshrl.u32 %v881_v0, 5  ;;  %v884_v19 = vsub.s32 32, %v883_v57  ;;  %v886_v56 = vshll.u32 %v3496_v63, %v883_v57 }
  0xcc   :  { %v742_v33 = vor.u32 4788187, %v741_v13  ;;  %v745_v38 = vcvt.s32.f32 %v738_v37  ;;  %v2935_v41 = vshrl.u32 %v827_v42, 30  ;;  %v889_v59 = vshll.u32 %v3490_v1, %v883_v57 }
  0xcd   :  { %v887_v12 = vshrl.u32 %v3490_v1, %v884_v19  ;;  %v890_v25 = vshrl.u32 %v3488_v4, %v884_v19  ;;  %v892_v18 = vshll.u32 %v3488_v4, %v883_v57  ;;  %v895_v15 = vshll.u32 %v3486_v7, %v883_v57 }
  0xce   :  { %v743_v44 = vand.u32 2147483647, %v742_v33  ;;  %v829_v0 = vshll.u32 %v2935_v41, 30  ;;  %v893_v21 = vshrl.u32 %v3486_v7, %v884_v19  ;;  %v896_v13 = vshrl.u32 %v2342_v10, %v884_v19 }
  0xcf   :  { %v2947_v37 = vsel %vm446_vm12, nan, %v455_v34  ;;  %v2951_v42 = vsel %vm551_vm9, %v554_v24, %v557_v27  ;;  %v3523_v45 = vand.u32 2147483647, %v2390_v48  ;;  %v877_v33 = vor.u32 8388608, %v876_v23 }
  0xd0   :  { %v888_v22 = vor.u32 %v887_v12, %v886_v56  ;;  %v746_v29 = vmul.f32 %v745_v38, %v743_v44  ;;  %v2959_v7 = vsub.s32 %v826_v55, %v829_v0  ;;  %v891_v4 = vor.u32 %v890_v25, %v889_v59 }
  0xd1   :  { %vm2955_vm15 = vcmp.le.f32.partialorder %v3523_v45, 0.7853982  ;;  %v898_v1 = vshll.u32 %v2342_v10, %v883_v57  ;;  %v2962_v34 = vpop.eup %2265  ;;  %v897_v60 = vor.u32 %v896_v13, %v895_v15  ;;  %v899_v39 = vshrl.u32 %v3507_v16, %v884_v19 }
  0xd2   :  { %3526 = vst [vmem:[#allocation15_spill] sm:$0xff] %v2962_v34  ;;  %vm901_vm0 = vcmp.lt.s32.totalorder %v2932_v36, 1  ;;  %v975_v45 = vand.u32 2139095040, %v2396_v51  ;;  %vm655_vm1 = vcmp.eq.s32.totalorder %v2899_v35, 0  ;;  %vm658_vm2 = vcmp.eq.s32.totalorder %v2899_v35, 2 }
  0xd3   :  { %v2972_v55 = vsel %vm665_vm14, %v749_v6, %v2826_v46  ;;  %v832_v24 = vsub.s32 0, %v2959_v7  ;;  %v885_v27 = vshrl.u32 %v3496_v63, %v884_v19  ;;  %v894_v57 = vor.u32 %v893_v21, %v892_v18  ;;  %v2976_v23 = vpop.eup %2267 }
  0xd4   :  { %v747_v56 = vxor.u32 2147483648, %v746_v29  ;;  %vm903_vm3 = vcmp.lt.s32.totalorder %v2932_v36, 3  ;;  %vm904_vm4 = vcmp.lt.s32.totalorder %v2932_v36, 4  ;;  %v917_v38 = vshll.u32 %v877_v33, 8 }
  0xd5   :  { %v2138_v59 = vmin.u32 %v832_v24, %v2959_v7  ;;  %v900_v12 = vor.u32 %v899_v39, %v898_v1  ;;  %vm902_vm5 = vcmp.lt.s32.totalorder %v2932_v36, 2  ;;  %v909_v46 = vsel %vm901_vm0, %v888_v22, %v891_v4 }
  0xd6   :  { %vm654_vm6 = vcmp.lt.s32.totalorder %v2899_v35, 2  ;;  %v3493_v21 = vxor.u32 2147483648, %v2962_v34  ;;  %v906_v6 = vsel %vm904_vm4, %v894_v57, 2102212464  ;;  %v910_v19 = vsel %vm904_vm4, %v897_v60, 920167782 }
  0xd7   :  { %v976_v25 = vshrl.u32 %v975_v45, 23  ;;  %v3494_v18 = vxor.u32 2147483648, %v2976_v23  ;;  %v834_v15 = vclz %v2138_v59  ;;  %v905_v1 = vsel %vm901_vm0, %v885_v27, %v888_v22 }
  0xd8   :  { %v911_v44 = vsel %vm903_vm3, %v894_v57, %v910_v19  ;;  %v748_v0 = vsel %vm665_vm14, %v747_v56, %v746_v29  ;;  %v907_v13 = vsel %vm903_vm3, %v891_v4, %v906_v6  ;;  %v913_v39 = vsel %vm901_vm0, %v891_v4, %v894_v57 }
  0xd9   :  { %v912_v33 = vsel %vm902_vm5, %v909_v46, %v911_v44  ;;  %v2139_v45 = vadd.s32 4294967294, %v834_v15  ;;  %v914_v24 = vsel %vm904_vm4, %v900_v12, 1326507024  ;;  %vm549_vm7 = vweird.f32 %v2378_v14 }
  0xda   :  { %v3005_v22 = vmul.u32.u64.low %v917_v38, %v912_v33  ;;  %v3006_v27 = vmul.u32.u64.high %v917_v38, %v912_v33, %v3005_v22  ;;  %v822_v29 = vadd.s32 %v2869_v61, %v2879_v9  ;;  %v915_v56 = vsel %vm903_vm3, %v897_v60, %v914_v24 }
  0xdb   :  { %v3495_v59 = vand.u32 2147483647, %v2396_v51  ;;  %v2145_v46 = vadd.s32 4294967169, %v976_v25  ;;  %vm652_vm8 = vweird.f32 %v2387_v40  ;;  %v751_v4 = vsel %vm2955_vm15, %v2390_v48, %v748_v0 }
  0xdc   :  { %vm768_vm9 = vcmp.lt.s32.totalorder %v2392_v49, 0  ;;  %vm2140_vm10 = vcmp.lt.s32.totalorder %v2139_v45, 0  ;;  %v908_v57 = vsel %vm902_vm5, %v905_v1, %v907_v13  ;;  %v916_v61 = vsel %vm902_vm5, %v913_v39, %v915_v56 }
  0xdd   :  { %v837_v9 = vsel %vm2140_vm10, 0, %v2139_v45  ;;  %v3024_v60 = vmul.u32.u64.low %v917_v38, %v916_v61  ;;  %v3025_v12 = vmul.u32.u64.high %v917_v38, %v916_v61, %v3024_v60  ;;  %v982_v6 = vadd.s32 1, %v2145_v46 }
  0xde   :  { %v838_v19 = vsub.s32 32, %v837_v9  ;;  %v839_v25 = vshll.u32 %v2959_v7, %v837_v9  ;;  %v842_v15 = vsub.s32 4294967266, %v837_v9  ;;  %v927_v44 = vadd.s32 1, %v3006_v27 }
  0xdf   :  { %v657_v1 = vsel %vm655_vm1, %v2962_v34, %v3494_v18  ;;  %v660_v36 = vsel %vm658_vm2, %v3493_v21, %v2976_v23  ;;  %v924_v0 = vmul.u32 %v917_v38, %v908_v57  ;;  %vm983_vm11 = vcmp.gt.s32.totalorder %v982_v6, 0 }
  0xe0   :  { %v840_v13 = vshrl.u32 %v822_v29, %v838_v19  ;;  %v843_v33 = vadd.s32 127, %v842_v15  ;;  %v979_v7 = vand.u32 8388607, %v3495_v59  ;;  %v984_v39 = vsel %vm983_vm11, %v982_v6, 0 }
  0xe1   :  { %2269 = vcosq.f32 %v751_v4  ;;  %v852_v45 = vsub.s32 4, %v2935_v41  ;;  %vm926_vm13 = vc.u32 %v3025_v12, %v3005_v22  ;;  %v986_v24 = vand.u32 31, %v984_v39 }
  0xe2   :  { %v661_v56 = vsel %vm654_vm6, %v657_v1, %v660_v36  ;;  %v841_v46 = vor.u32 %v840_v13, %v839_v25  ;;  %v844_v61 = vshll.u32 %v843_v33, 23  ;;  %v928_v38 = vsel %vm926_vm13, %v927_v44, %v3006_v27 }
  0xe3   :  { %v3050_v29 = vsel %vm2955_vm15, 0, %v2972_v55  ;;  %2271 = vsinq.f32 %v751_v4  ;;  %v929_v57 = vadd.s32 %v928_v38, %v924_v0  ;;  %v987_v9 = vsub.s32 32, %v986_v24 }
  0xe4   :  { %v3055_v60 = vsel %vm549_vm7, nan, %v2951_v42  ;;  %v3058_v35 = vand.u32 3, %v3050_v29  ;;  %v845_v6 = vor.u32 4788187, %v844_v61  ;;  %v848_v19 = vcvt.s32.f32 %v841_v46 }
  0xe5   :  { %v3062_v27 = vsel %vm652_vm8, nan, %v661_v56  ;;  %v3067_v28 = vsel %vm768_vm9, %v852_v45, %v2935_v41  ;;  %v930_v55 = vadd.s32 536870912, %v929_v57  ;;  %v980_v4 = vor.u32 8388608, %v979_v7 }
  0xe6   :  { %v3527_v25 = vand.u32 2147483647, %v2392_v49  ;;  %v846_v15 = vand.u32 2147483647, %v845_v6  ;;  %v985_v44 = vshrl.u32 %v984_v39, 5  ;;  %v989_v1 = vshll.u32 %v3496_v63, %v986_v24 }
  0xe7   :  { %v3506_v36 = vand.u32 2147483647, %v2398_v52  ;;  %v3077_v0 = vshrl.u32 %v930_v55, 30  ;;  %v3530_v13 = vmov 2475754826   ;;  %v3087_v21 = vshll.u32 %v980_v4, 8 }
  0xe8   :  { %vm3071_vm14 = vcmp.le.f32.partialorder %v3527_v25, 0.7853982  ;;  %v990_v33 = vshrl.u32 %v3530_v13, %v987_v9  ;;  %v992_v41 = vshll.u32 %v3530_v13, %v986_v24  ;;  %v3531_v45 = vmov 2131351028  }
  0xe9   :  { %v993_v7 = vshrl.u32 %v3531_v45, %v987_v9  ;;  %v849_v56 = vmul.f32 %v848_v19, %v846_v15  ;;  %v995_v46 = vshll.u32 %v3531_v45, %v986_v24  ;;  %v3532_v61 = vmov 2102212464  }
  0xea   :  { %v996_v38 = vshrl.u32 %v3532_v61, %v987_v9  ;;  %v998_v6 = vshll.u32 %v3532_v61, %v986_v24  ;;  %v932_v39 = vshll.u32 %v3077_v0, 30  ;;  %v999_v25 = vshrl.u32 %v2342_v10, %v987_v9 }
  0xeb   :  { %v1078_v55 = vand.u32 2139095040, %v2398_v52  ;;  %vm758_vm15 = vcmp.eq.s32.totalorder %v3058_v35, 0  ;;  %vm761_vm0 = vcmp.eq.s32.totalorder %v3058_v35, 2  ;;  %v850_v18 = vxor.u32 2147483648, %v849_v56  ;;  %v3098_v63 = vpop.eup %2269 }
  0xec   :  { %v1001_v19 = vshll.u32 %v2342_v10, %v986_v24  ;;  %v1002_v15 = vshrl.u32 %v3507_v16, %v987_v9  ;;  %v3096_v59 = vand.u32 8388607, %v3506_v36  ;;  %v3100_v3 = vsub.s32 %v929_v57, %v932_v39 }
  0xed   :  { %v3533_v4 = vmov 683565275   ;;  %v991_v30 = vor.u32 %v990_v33, %v989_v1  ;;  %v994_v40 = vor.u32 %v993_v7, %v992_v41  ;;  %v925_v53 = vadd.s32 %v3005_v22, %v3025_v12  ;;  %v3105_v24 = vpop.eup %2271 }
  0xee   :  { %v988_v2 = vshrl.u32 %v3533_v4, %v987_v9  ;;  %v997_v14 = vor.u32 %v996_v38, %v995_v46  ;;  %v1000_v34 = vor.u32 %v999_v25, %v998_v6  ;;  %vm1004_vm1 = vcmp.lt.s32.totalorder %v985_v44, 1 }
  0xef   :  { %vm757_vm2 = vcmp.lt.s32.totalorder %v3058_v35, 2  ;;  %v935_v36 = vsub.s32 0, %v3100_v3  ;;  %v1003_v16 = vor.u32 %v1002_v15, %v1001_v19  ;;  %vm1007_vm3 = vcmp.lt.s32.totalorder %v985_v44, 4 }
  0xf0   :  { %v1079_v57 = vshrl.u32 %v1078_v55, 23  ;;  %v3508_v39 = vxor.u32 2147483648, %v3098_v63  ;;  %v851_v9 = vsel %vm768_vm9, %v850_v18, %v849_v56  ;;  %vm1006_vm4 = vcmp.lt.s32.totalorder %v985_v44, 3 }
  0xf1   :  { %v1009_v22 = vsel %vm1007_vm3, %v997_v14, 2102212464  ;;  %vm871_vm5 = vcmp.lt.s32.totalorder %v2394_v50, 0  ;;  %v2142_v12 = vmin.u32 %v935_v36, %v3100_v3  ;;  %vm1005_vm6 = vcmp.lt.s32.totalorder %v985_v44, 2 }
  0xf2   :  { %v1008_v1 = vsel %vm1004_vm1, %v988_v2, %v991_v30  ;;  %v1012_v33 = vsel %vm1004_vm1, %v991_v30, %v994_v40  ;;  %v3509_v41 = vxor.u32 2147483648, %v3105_v24  ;;  %v1010_v7 = vsel %vm1006_vm4, %v994_v40, %v1009_v22 }
  0xf3   :  { %v1013_v46 = vsel %vm1007_vm3, %v1000_v34, 920167782  ;;  %v1016_v18 = vsel %vm1004_vm1, %v994_v40, %v997_v14  ;;  %v854_v56 = vsel %vm3071_vm14, %v2392_v49, %v851_v9  ;;  %v937_v38 = vclz %v2142_v12 }
  0xf4   :  { %v1014_v36 = vsel %vm1006_vm4, %v997_v14, %v1013_v46  ;;  %v1017_v6 = vsel %vm1007_vm3, %v1003_v16, 1326507024  ;;  %vm755_vm9 = vweird.f32 %v2390_v48  ;;  %v3534_v2 = vand.u32 2147483647, %v2394_v50 }
  0xf5   :  { %v1011_v25 = vsel %vm1005_vm6, %v1008_v1, %v1010_v7  ;;  %v1015_v40 = vsel %vm1005_vm6, %v1012_v33, %v1014_v36  ;;  %v1018_v55 = vsel %vm1006_vm4, %v1000_v34, %v1017_v6  ;;  %v2149_v19 = vadd.s32 4294967169, %v1079_v57 }
  0xf6   :  { %vm3129_vm10 = vcmp.le.f32.partialorder %v3534_v2, 0.7853982  ;;  %v2143_v15 = vadd.s32 4294967294, %v937_v38  ;;  %v1019_v14 = vsel %vm1005_vm6, %v1016_v18, %v1018_v55  ;;  %v955_v22 = vsub.s32 4, %v3077_v0 }
  0xf7   :  { %v3138_v16 = vmul.u32.u64.low %v3087_v21, %v1015_v40  ;;  %v3139_v9 = vmul.u32.u64.high %v3087_v21, %v1015_v40, %v3138_v16  ;;  %v3143_v12 = vmul.u32.u64.low %v3087_v21, %v1019_v14  ;;  %v3144_v46 = vmul.u32.u64.high %v3087_v21, %v1019_v14, %v3143_v12 }
  0xf8   :  { %v1085_v2 = vadd.s32 1, %v2149_v19  ;;  %v760_v34 = vsel %vm758_vm15, %v3098_v63, %v3509_v41  ;;  %v763_v44 = vsel %vm761_vm0, %v3508_v39, %v3105_v24  ;;  %2273 = vcosq.f32 %v854_v56 }
  0xf9   :  { %vm2144_vm11 = vcmp.lt.s32.totalorder %v2143_v15, 0  ;;  %2275 = vsinq.f32 %v854_v56  ;;  %v1027_v1 = vmul.u32 %v3087_v21, %v1011_v25  ;;  %v1030_v38 = vadd.s32 1, %v3139_v9 }
  0xfa   :  { %v940_v57 = vsel %vm2144_vm11, 0, %v2143_v15  ;;  %vm1086_vm13 = vcmp.gt.s32.totalorder %v1085_v2, 0  ;;  %v764_v36 = vsel %vm757_vm2, %v760_v34, %v763_v44  ;;  %v956_v6 = vsel %vm871_vm5, %v955_v22, %v3077_v0 }
  0xfb   :  { %v941_v33 = vsub.s32 32, %v940_v57  ;;  %v942_v7 = vshll.u32 %v3100_v3, %v940_v57  ;;  %v945_v18 = vsub.s32 4294967266, %v940_v57  ;;  %vm1029_vm15 = vc.u32 %v3144_v46, %v3138_v16 }
  0xfc   :  { %v1087_v56 = vsel %vm1086_vm13, %v1085_v2, 0  ;;  %v3168_v21 = vsel %vm3071_vm14, 0, %v3067_v28  ;;  %v1031_v40 = vsel %vm1029_vm15, %v1030_v38, %v3139_v9  ;;  %v1083_v19 = vor.u32 8388608, %v3096_v59 }
  0xfd   :  { %v943_v25 = vshrl.u32 %v925_v53, %v941_v33  ;;  %v946_v3 = vadd.s32 127, %v945_v18  ;;  %v3172_v55 = vand.u32 3, %v3168_v21  ;;  %v1032_v35 = vadd.s32 %v1031_v40, %v1027_v1 }
  0xfe   :  { %v1089_v15 = vand.u32 31, %v1087_v56  ;;  %v3177_v0 = vsel %vm755_vm9, nan, %v764_v36  ;;  %v3181_v28 = vsel %vm3129_vm10, 0, %v956_v6  ;;  %v3188_v12 = vmul.f32 %v2947_v37, %v2652_v32 }
  0xff   :  { %v944_v14 = vor.u32 %v943_v25, %v942_v7  ;;  %v947_v22 = vshll.u32 %v946_v3, 23  ;;  %v3184_v53 = vand.u32 3, %v3181_v28  ;;  %v1033_v42 = vadd.s32 536870912, %v1032_v35 }
 0x100   :  { %v1090_v9 = vsub.s32 32, %v1089_v15  ;;  %v3192_v34 = vmul.f32 %v3055_v60, %v2659_v43  ;;  %v3196_v44 = vmul.f32 %v3062_v27, %v2689_v47  ;;  %vm864_vm14 = vcmp.eq.s32.totalorder %v3172_v55, 2 }
 0x101   :  { %v948_v59 = vor.u32 4788187, %v947_v22  ;;  %v951_v2 = vcvt.s32.f32 %v944_v14  ;;  %v3200_v57 = vadd.s32 %v3138_v16, %v3144_v46  ;;  %v3202_v1 = vshrl.u32 %v1033_v42, 30 }
 0x102   :  { %3537 = vst [vmem:[#allocation16_spill] sm:$0xff] %v3196_v44  ;;  %v1092_v37 = vshll.u32 %v3533_v4, %v1089_v15  ;;  %v3205_v33 = vshll.u32 %v1083_v19, 8  ;;  %v3207_v7 = vpop.eup %2273  ;;  %v1093_v60 = vshrl.u32 %v3530_v13, %v1090_v9  ;;  %v1095_v38 = vshll.u32 %v3530_v13, %v1089_v15 }
 0x103   :  { %v949_v18 = vand.u32 2147483647, %v948_v59  ;;  %v1096_v27 = vshrl.u32 %v3531_v45, %v1090_v9  ;;  %v3212_v36 = vpop.eup %2275  ;;  %v1035_v16 = vshll.u32 %v3202_v1, 30  ;;  %v1088_v46 = vshrl.u32 %v1087_v56, 5 }
 0x104   :  { %v1101_v6 = vshll.u32 %v3532_v61, %v1089_v15  ;;  %v1279_v25 = vadd.s32 3, %v2796_v8  ;;  %vm861_vm0 = vcmp.eq.s32.totalorder %v3172_v55, 0  ;;  %v1098_v40 = vshll.u32 %v3531_v45, %v1089_v15 }
 0x105   :  { %v952_v3 = vmul.f32 %v951_v2, %v949_v18  ;;  %v1099_v19 = vshrl.u32 %v3532_v61, %v1090_v9  ;;  %v1102_v13 = vshrl.u32 %v2342_v10, %v1090_v9  ;;  %v865_v14 = vxor.u32 2147483648, %v3207_v7 }
 0x106   :  { %v3222_v22 = vsub.s32 %v1032_v35, %v1035_v16  ;;  %v1104_v42 = vshll.u32 %v2342_v10, %v1089_v15  ;;  %v3538_v56 = vmov 1326507024   ;;  %v1091_v8 = vshrl.u32 %v3533_v4, %v1090_v9 }
 0x107   :  { %v1105_v59 = vshrl.u32 %v3538_v56, %v1090_v9  ;;  %v953_v39 = vxor.u32 2147483648, %v952_v3  ;;  %v1094_v41 = vor.u32 %v1093_v60, %v1092_v37  ;;  %v1097_v44 = vor.u32 %v1096_v27, %v1095_v38 }
 0x108   :  { %vm860_vm1 = vcmp.lt.s32.totalorder %v3172_v55, 2  ;;  %v862_v45 = vxor.u32 2147483648, %v3212_v36  ;;  %v1038_v61 = vsub.s32 0, %v3222_v22  ;;  %v1103_v2 = vor.u32 %v1102_v13, %v1101_v6 }
 0x109   :  { %vm1107_vm2 = vcmp.lt.s32.totalorder %v1088_v46, 1  ;;  %v954_v35 = vsel %vm871_vm5, %v953_v39, %v952_v3  ;;  %v1100_v18 = vor.u32 %v1099_v19, %v1098_v40  ;;  %v1106_v10 = vor.u32 %v1105_v59, %v1104_v42 }
 0x10a   :  { %vm1110_vm3 = vcmp.lt.s32.totalorder %v1088_v46, 4  ;;  %v957_v4 = vsel %vm3129_vm10, %v2394_v50, %v954_v35  ;;  %v2146_v15 = vmin.u32 %v1038_v61, %v3222_v22  ;;  %vm1108_vm4 = vcmp.lt.s32.totalorder %v1088_v46, 2 }
 0x10b   :  { %vm1109_vm6 = vcmp.lt.s32.totalorder %v1088_v46, 3  ;;  %2277 = vcosq.f32 %v957_v4  ;;  %v1111_v9 = vsel %vm1107_vm2, %v1091_v8, %v1094_v41  ;;  %v1112_v37 = vsel %vm1110_vm3, %v1100_v18, 2102212464 }
 0x10c   :  { %v1115_v60 = vsel %vm1107_vm2, %v1094_v41, %v1097_v44  ;;  %2279 = vsinq.f32 %v957_v4  ;;  %vm974_vm5 = vcmp.lt.s32.totalorder %v2396_v51, 0  ;;  %v1040_v39 = vclz %v2146_v15 }
 0x10d   :  { %v1113_v38 = vsel %vm1109_vm6, %v1097_v44, %v1112_v37  ;;  %v1116_v30 = vsel %vm1110_vm3, %v1103_v2, 920167782  ;;  %v866_v27 = vsel %vm864_vm14, %v865_v14, %v3212_v36  ;;  %v1119_v6 = vsel %vm1107_vm2, %v1097_v44, %v1100_v18 }
 0x10e   :  { %v1117_v16 = vsel %vm1109_vm6, %v1100_v18, %v1116_v30  ;;  %v1120_v41 = vsel %vm1110_vm3, %v1106_v10, 1326507024  ;;  %vm964_vm10 = vcmp.eq.s32.totalorder %v3184_v53, 0  ;;  %vm967_vm11 = vcmp.eq.s32.totalorder %v3184_v53, 2 }
 0x10f   :  { %v2147_v3 = vadd.s32 4294967294, %v1040_v39  ;;  %v1118_v40 = vsel %vm1108_vm4, %v1115_v60, %v1117_v16  ;;  %v1121_v19 = vsel %vm1109_vm6, %v1103_v2, %v1120_v41  ;;  %v1280_v13 = vand.u32 3, %v1279_v25 }
 0x110   :  { %v1114_v42 = vsel %vm1108_vm4, %v1111_v9, %v1113_v38  ;;  %v1122_v56 = vsel %vm1108_vm4, %v1119_v6, %v1121_v19  ;;  %v3257_v59 = vmul.u32.u64.low %v3205_v33, %v1118_v40  ;;  %v3258_v8 = vmul.u32.u64.high %v3205_v33, %v1118_v40, %v3257_v59 }
 0x111   :  { %v863_v44 = vsel %vm861_vm0, %v3207_v7, %v862_v45  ;;  %vm2148_vm13 = vcmp.lt.s32.totalorder %v2147_v3, 0  ;;  %v3267_v61 = vmul.u32.u64.low %v3205_v33, %v1122_v56  ;;  %v3268_v2 = vmul.u32.u64.high %v3205_v33, %v1122_v56, %v3267_v61 }
 0x112   :  { %vm858_vm15 = vweird.f32 %v2392_v49  ;;  %vm963_vm14 = vcmp.lt.s32.totalorder %v3184_v53, 2  ;;  %v3539_v46 = vand.u32 2147483647, %v2396_v51  ;;  %v1043_v35 = vsel %vm2148_vm13, 0, %v2147_v3 }
 0x113   :  { %v1058_v18 = vsub.s32 4, %v3202_v1  ;;  %v3281_v10 = vmul.f32 %v3177_v0, %v2695_v62  ;;  %v1383_v4 = vadd.s32 3, %v2805_v54  ;;  %v1044_v15 = vsub.s32 32, %v1043_v35 }
 0x114   :  { %vm3274_vm2 = vcmp.le.f32.partialorder %v3539_v46, 0.7853982  ;;  %v1045_v9 = vshll.u32 %v3222_v22, %v1043_v35  ;;  %v1048_v37 = vsub.s32 4294967266, %v1043_v35  ;;  %v1130_v60 = vmul.u32 %v3205_v33, %v1114_v42 }
 0x115   :  { %v867_v39 = vsel %vm860_vm1, %v863_v44, %v866_v27  ;;  %v1133_v38 = vadd.s32 1, %v3258_v8  ;;  %vm1282_vm0 = vcmp.eq.s32.totalorder %v1280_v13, 0  ;;  %v1384_v30 = vand.u32 3, %v1383_v4  ;;  %v3292_v54 = vpop.eup %2277 }
 0x116   :  { %v1046_v16 = vshrl.u32 %v3200_v57, %v1044_v15  ;;  %v1049_v6 = vadd.s32 127, %v1048_v37  ;;  %vm1132_vm3 = vc.u32 %v3268_v2, %v3257_v59  ;;  %vm1285_vm4 = vcmp.eq.s32.totalorder %v1280_v13, 2  ;;  %v3299_v22 = vpop.eup %2279 }
 0x117   :  { %v1059_v0 = vsel %vm974_vm5, %v1058_v18, %v3202_v1  ;;  %v1134_v55 = vsel %vm1132_vm3, %v1133_v38, %v3258_v8  ;;  %vm1281_vm1 = vcmp.lt.s32.totalorder %v1280_v13, 2  ;;  %v1487_v33 = vadd.s32 3, %v2893_v20 }
 0x118   :  { %vm961_vm6 = vweird.f32 %v2394_v50  ;;  %v1047_v57 = vor.u32 %v1046_v16, %v1045_v9  ;;  %v1050_v27 = vshll.u32 %v1049_v6, 23  ;;  %v1135_v41 = vadd.s32 %v1134_v55, %v1130_v60 }
 0x119   :  { %v3542_v3 = vxor.u32 2147483648, %v2846_v5  ;;  %v965_v19 = vxor.u32 2147483648, %v3299_v22  ;;  %v968_v1 = vxor.u32 2147483648, %v3292_v54  ;;  %v3543_v42 = vxor.u32 2147483648, %v2840_v17 }
 0x11a   :  { %vm1386_vm13 = vcmp.eq.s32.totalorder %v1384_v30, 0  ;;  %v1051_v56 = vor.u32 4788187, %v1050_v27  ;;  %v1054_v8 = vcvt.s32.f32 %v1047_v57  ;;  %v1136_v44 = vadd.s32 536870912, %v1135_v41 }
 0x11b   :  { %v1284_v40 = vsel %vm1282_vm0, %v2840_v17, %v3542_v3  ;;  %v1287_v20 = vsel %vm1285_vm4, %v3543_v42, %v2846_v5  ;;  %vm1389_vm3 = vcmp.eq.s32.totalorder %v1384_v30, 2  ;;  %v966_v61 = vsel %vm964_vm10, %v3292_v54, %v965_v19 }
 0x11c   :  { %v969_v46 = vsel %vm967_vm11, %v968_v1, %v3299_v22  ;;  %v1488_v35 = vand.u32 3, %v1487_v33  ;;  %v1591_v17 = vadd.s32 3, %v3050_v29  ;;  %v868_v5 = vsel %vm858_vm15, nan, %v867_v39 }
 0x11d   :  { %v1052_v18 = vand.u32 2147483647, %v1051_v56  ;;  %v1061_v4 = vsel %vm3274_vm2, 0, %v1059_v0  ;;  %v1137_v15 = vshrl.u32 %v1136_v44, 30  ;;  %v1288_v37 = vsel %vm1281_vm1, %v1284_v40, %v1287_v20 }
 0x11e   :  { %v3326_v9 = vand.u32 3, %v1061_v4  ;;  %vm1385_vm10 = vcmp.lt.s32.totalorder %v1384_v30, 2  ;;  %v3544_v60 = vxor.u32 2147483648, %v2895_v58  ;;  %v970_v29 = vsel %vm963_vm14, %v966_v61, %v969_v46 }
 0x11f   :  { %v1055_v16 = vmul.f32 %v1054_v8, %v1052_v18  ;;  %v1138_v39 = vshll.u32 %v1137_v15, 30  ;;  %v3545_v6 = vxor.u32 2147483648, %v2866_v11  ;;  %v3340_v55 = vmul.f32 %v868_v5, %v2701_v31 }
 0x120   :  { %v1388_v38 = vsel %vm1386_vm13, %v2866_v11, %v3544_v60  ;;  %vm1490_vm11 = vcmp.eq.s32.totalorder %v1488_v35, 0  ;;  %v1592_v13 = vand.u32 3, %v1591_v17  ;;  %v1695_v33 = vadd.s32 3, %v3168_v21 }
 0x121   :  { %v1391_v0 = vsel %vm1389_vm3, %v3545_v6, %v2895_v58  ;;  %v1056_v57 = vxor.u32 2147483648, %v1055_v16  ;;  %vm1077_vm0 = vcmp.lt.s32.totalorder %v2398_v52, 0  ;;  %v1131_v53 = vadd.s32 %v3257_v59, %v3268_v2  ;;  %v3547_v2 = vld [vmem:[#allocation15_spill] sm:$0xff] }
 0x122   :  { %v3346_v27 = vsub.s32 %v1135_v41, %v1138_v39  ;;  %vm1493_vm14 = vcmp.eq.s32.totalorder %v1488_v35, 2  ;;  %v971_v11 = vsel %vm961_vm6, nan, %v970_v29  ;;  %v1289_v58 = vsel %vm446_vm12, nan, %v1288_v37 }
 0x123   :  { %v1392_v3 = vsel %vm1385_vm10, %v1388_v38, %v1391_v0  ;;  %vm1594_vm4 = vcmp.eq.s32.totalorder %v1592_v13, 0  ;;  %v1057_v21 = vsel %vm974_vm5, %v1056_v57, %v1055_v16  ;;  %vm1489_vm1 = vcmp.lt.s32.totalorder %v1488_v35, 2  ;;  %v3557_v35 = vld [vmem:[#allocation16_spill] sm:$0xff] }
 0x124   :  { %v1141_v40 = vsub.s32 0, %v3346_v27  ;;  %v3546_v59 = vxor.u32 2147483648, %v2976_v23  ;;  %v1060_v42 = vsel %vm3274_vm2, %v2396_v51, %v1057_v21  ;;  %v3548_v26 = vxor.u32 2147483648, %v3547_v2 }
 0x125   :  { %vm1597_vm12 = vcmp.eq.s32.totalorder %v1592_v13, 2  ;;  %v1696_v20 = vand.u32 3, %v1695_v33  ;;  %2281 = vcosq.f32 %v1060_v42  ;;  %vm1593_vm5 = vcmp.lt.s32.totalorder %v1592_v13, 2 }
 0x126   :  { %v1492_v41 = vsel %vm1490_vm11, %v3547_v2, %v3546_v59  ;;  %v1495_v30 = vsel %vm1493_vm14, %v3548_v26, %v2976_v23  ;;  %v2150_v56 = vmin.u32 %v1141_v40, %v3346_v27  ;;  %v3549_v8 = vxor.u32 2147483648, %v3105_v24 }
 0x127   :  { %2283 = vsinq.f32 %v1060_v42  ;;  %v1161_v61 = vsub.s32 4, %v1137_v15  ;;  %v3550_v25 = vxor.u32 2147483648, %v3098_v63  ;;  %vm1697_vm2 = vcmp.lt.s32.totalorder %v1696_v20, 2 }
 0x128   :  { %v1596_v44 = vsel %vm1594_vm4, %v3098_v63, %v3549_v8  ;;  %vm1070_vm13 = vcmp.eq.s32.totalorder %v3326_v9, 2  ;;  %v1143_v23 = vclz %v2150_v56  ;;  %v1496_v17 = vsel %vm1489_vm1, %v1492_v41, %v1495_v30  ;;  %v2027_v41 = vld [vmem:[#allocation3 + $0x8] sm:$0xf] }
 0x129   :  { %v1599_v46 = vsel %vm1597_vm12, %v3550_v25, %v3105_v24  ;;  %vm1698_vm3 = vcmp.eq.s32.totalorder %v1696_v20, 0  ;;  %vm1701_vm10 = vcmp.eq.s32.totalorder %v1696_v20, 2  ;;  %vm1067_vm11 = vcmp.eq.s32.totalorder %v3326_v9, 0  ;;  %v2028_v20 = vld [vmem:[#allocation3 + $0x10] sm:$0xf] }
 0x12a   :  { %v1600_v5 = vsel %vm1593_vm5, %v1596_v44, %v1599_v46  ;;  %v1700_v18 = vsel %vm1698_vm3, %v3207_v7, %v862_v45  ;;  %v1703_v63 = vsel %vm1701_vm10, %v865_v14, %v3212_v36  ;;  %v1799_v24 = vadd.s32 3, %v3181_v28  ;;  %v3552_v45 = vld [vmem:[#allocation13_spill] sm:$0xff]  ;;  %v2029_v25 = vld [vmem:[#allocation3 + $0x18] sm:$0xf] }
 0x12b   :  { %vm1066_vm14 = vcmp.lt.s32.totalorder %v3326_v9, 2  ;;  %v2151_v37 = vadd.s32 4294967294, %v1143_v23  ;;  %v1393_v60 = vsel %vm549_vm7, nan, %v1392_v3  ;;  %v1704_v38 = vsel %vm1697_vm2, %v1700_v18, %v1703_v63  ;;  %v3558_v9 = vld [vmem:[#allocation14_spill] sm:$0xff] }
 0x12c   :  { %v1903_v29 = vadd.s32 3, %v1061_v4  ;;  %vm1064_vm4 = vweird.f32 %v2396_v51  ;;  %v3388_v16 = vsel %vm1077_vm0, %v1161_v61, %v1137_v15  ;;  %v3391_v39 = vmul.f32 %v971_v11, %v3552_v45 }
 0x12d   :  { %v1497_v28 = vsel %vm652_vm8, nan, %v1496_v17  ;;  %v1800_v36 = vand.u32 3, %v1799_v24  ;;  %vm2152_vm1 = vcmp.lt.s32.totalorder %v2151_v37, 0  ;;  %v1601_v14 = vsel %vm755_vm9, nan, %v1600_v5  ;;  %v2031_v17 = vld [vmem:[#allocation3 + $0x28] sm:$0xf] }
 0x12e   :  { %v1705_v4 = vsel %vm858_vm15, nan, %v1704_v38  ;;  %v1904_v6 = vand.u32 3, %v1903_v29  ;;  %v1146_v0 = vsel %vm2152_vm1, 0, %v2151_v37  ;;  %v3407_v49 = vmul.f32 %v1289_v58, %v2652_v32  ;;  %v2026_v58 = vld [vmem:[#allocation3] sm:$0xf] }
 0x12f   :  { %vm1801_vm7 = vcmp.lt.s32.totalorder %v1800_v36, 2  ;;  %vm1802_vm12 = vcmp.eq.s32.totalorder %v1800_v36, 0  ;;  %vm1805_vm5 = vcmp.eq.s32.totalorder %v1800_v36, 2  ;;  %v1147_v15 = vsub.s32 32, %v1146_v0  ;;  %v2282_v21 = vpop.eup %2281  ;;  %v2032_v5 = vld [vmem:[#allocation3 + $0x30] sm:$0xf] }
 0x130   :  { %v1148_v13 = vshll.u32 %v3346_v27, %v1146_v0  ;;  %v1151_v33 = vsub.s32 4294967266, %v1146_v0  ;;  %v1804_v57 = vsel %vm1802_vm12, %v3292_v54, %v965_v19  ;;  %v1807_v48 = vsel %vm1805_vm5, %v968_v1, %v3299_v22  ;;  %v2050_v38 = vld [vmem:[#allocation3] sm:$0xf0]  ;;  %v2053_v36 = vld [vmem:[#allocation3 + $0x18] sm:$0xf0] }
 0x131   :  { %v3410_v11 = vmul.f32 %v1393_v60, %v2659_v43  ;;  %v3413_v3 = vmul.f32 %v1497_v28, %v2689_v47  ;;  %v1149_v27 = vshrl.u32 %v1131_v53, %v1147_v15  ;;  %v1808_v59 = vsel %vm1801_vm7, %v1804_v57, %v1807_v48  ;;  %v2284_v2 = vpop.eup %2283  ;;  %v2052_v28 = vld [vmem:[#allocation3 + $0x10] sm:$0xf0] }
 0x132   :  { %v1152_v40 = vadd.s32 127, %v1151_v33  ;;  %vm1909_vm8 = vcmp.eq.s32.totalorder %v1904_v6, 2  ;;  %v1071_v19 = vxor.u32 2147483648, %v2282_v21  ;;  %v1809_v54 = vsel %vm961_vm6, nan, %v1808_v59 }
 0x133   :  { %vm1905_vm9 = vcmp.lt.s32.totalorder %v1904_v6, 2  ;;  %vm1906_vm15 = vcmp.eq.s32.totalorder %v1904_v6, 0  ;;  %v1068_v32 = vxor.u32 2147483648, %v2284_v2  ;;  %v3554_v22 = vand.u32 2147483647, %v2398_v52 }
 0x134   :  { %v1150_v47 = vor.u32 %v1149_v27, %v1148_v13  ;;  %v1153_v1 = vshll.u32 %v1152_v40, 23  ;;  %v2021_v53 = vmul.f32 %v1601_v14, %v2695_v62  ;;  %v1072_v42 = vsel %vm1070_vm13, %v1071_v19, %v2284_v2  ;;  %v2030_v62 = vld [vmem:[#allocation3 + $0x20] sm:$0xf]  ;;  %v2055_v6 = vld [vmem:[#allocation3 + $0x28] sm:$0xf0] }
 0x135   :  { %vm3419_vm2 = vcmp.le.f32.partialorder %v3554_v22, 0.7853982  ;;  %v1911_v50 = vsel %vm1909_vm8, %v1071_v19, %v2284_v2  ;;  %v2022_v26 = vmul.f32 %v1705_v4, %v2701_v31  ;;  %v2023_v30 = vmul.f32 %v1809_v54, %v3552_v45  ;;  %v2054_v4 = vld [vmem:[#allocation3 + $0x20] sm:$0xf0] }
 0x136   :  { %v1069_v56 = vsel %vm1067_vm11, %v2282_v21, %v1068_v32  ;;  %v1154_v8 = vor.u32 4788187, %v1153_v1  ;;  %v1157_v44 = vcvt.s32.f32 %v1150_v47  ;;  %v1908_v61 = vsel %vm1906_vm15, %v2282_v21, %v1068_v32 }
 0x137   :  { %v1073_v46 = vsel %vm1066_vm14, %v1069_v56, %v1072_v42  ;;  %v1912_v23 = vsel %vm1905_vm9, %v1908_v61, %v1911_v50  ;;  %v2034_v31 = vadd.f32 %v2026_v58, %v3188_v12  ;;  %v2035_v18 = vadd.f32 %v2027_v41, %v3192_v34  ;;  %v2051_v34 = vld [vmem:[#allocation3 + $0x8] sm:$0xf0]  ;;  %v3560_v58 = vld [vmem:[#allocation12_spill] sm:$0xff] }
 0x138   :  { %v1074_v63 = vsel %vm1064_vm4, nan, %v1073_v46  ;;  %v1155_v24 = vand.u32 2147483647, %v1154_v8  ;;  %v1913_v37 = vsel %vm1064_vm4, nan, %v1912_v23  ;;  %v2036_v60 = vadd.f32 %v2028_v20, %v3557_v35 }
 0x139   :  { %v1184_v29 = vmul.f32 %v1074_v63, %v3558_v9  ;;  %v2024_v45 = vmul.f32 %v1913_v37, %v3558_v9  ;;  %v2037_v7 = vadd.f32 %v2029_v25, %v3281_v10  ;;  %v2038_v12 = vadd.f32 %v2030_v62, %v3340_v55  ;;  %2042 = vst [vmem:[#allocation6] sm:$0xf] %v2034_v31  ;;  %v2056_v10 = vld [vmem:[#allocation3 + $0x30] sm:$0xf0] }
 0x13a   :  { %2043 = vst [vmem:[#allocation6 + $0x8] sm:$0xf] %v2035_v18  ;;  %v1158_v14 = vmul.f32 %v1157_v44, %v1155_v24  ;;  %v2039_v51 = vadd.f32 %v2031_v17, %v3391_v39  ;;  %2044 = vst [vmem:[#allocation6 + $0x10] sm:$0xf] %v2036_v60  ;;  %v2066_v0 = vrot.slane %v3407_v49, 4  ;;  %v2067_v15 = vrot.slane %v3410_v11, 4 }
 0x13b   :  { %v2040_v13 = vadd.f32 %v2032_v5, %v1184_v29  ;;  %2045 = vst [vmem:[#allocation6 + $0x18] sm:$0xf] %v2037_v7  ;;  %2046 = vst [vmem:[#allocation6 + $0x20] sm:$0xf] %v2038_v12  ;;  %v2068_v55 = vrot.slane %v3413_v3, 4  ;;  %v2069_v33 = vrot.slane %v2021_v53, 4  ;;  %vm1167_vm1 = vweird.f32 %v2398_v52 }
 0x13c   :  { %v2070_v57 = vrot.slane %v2022_v26, 4  ;;  %v1159_v48 = vxor.u32 2147483648, %v1158_v14  ;;  %2047 = vst [vmem:[#allocation6 + $0x28] sm:$0xf] %v2039_v51  ;;  %v2071_v21 = vrot.slane %v2023_v30, 4  ;;  %v2072_v27 = vrot.slane %v2024_v45, 4 }
 0x13d   :  { %v2082_v39 = vadd.f32 %v2066_v0, %v2050_v38  ;;  %2048 = vst [vmem:[#allocation6 + $0x30] sm:$0xf] %v2040_v13  ;;  %v2083_v40 = vadd.f32 %v2067_v15, %v2051_v34  ;;  %v2084_v59 = vadd.f32 %v2068_v55, %v2052_v28  ;;  %v2085_v2 = vadd.f32 %v2069_v33, %v2053_v36  ;;  %v3559_v53 = vld [vmem:[#allocation11_spill] sm:$0xff]  ;;  %v2033_v17 = vld [vmem:[#allocation3 + $0x38] sm:$0xf] }
 0x13e   :  { %v2086_v49 = vadd.f32 %v2070_v57, %v2054_v4  ;;  %v1160_v11 = vsel %vm1077_vm0, %v1159_v48, %v1158_v14  ;;  %v2087_v19 = vadd.f32 %v2071_v21, %v2055_v6  ;;  %v2088_v54 = vadd.f32 %v2072_v27, %v2056_v10  ;;  %v2057_v18 = vld [vmem:[#allocation3 + $0x38] sm:$0xf0] }
 0x13f   :  { %2090 = vst [vmem:[#allocation6] sm:$0xf0] %v2082_v39  ;;  %v1163_v3 = vsel %vm3419_vm2, %v2398_v52, %v1160_v11  ;;  %v1164_v32 = vsel %vm3419_vm2, 0, %v3388_v16  ;;  %2091 = vst [vmem:[#allocation6 + $0x8] sm:$0xf0] %v2083_v40  ;;  %v340_v41 = vmul.f32 %v3560_v58, %v3559_v53  ;;  %vm341_vm6 = vcmp.eq.f32.partialorder %v3559_v53, inf }
 0x140   :  { %2092 = vst [vmem:[#allocation6 + $0x10] sm:$0xf0] %v2084_v59  ;;  %2093 = vst [vmem:[#allocation6 + $0x18] sm:$0xf0] %v2085_v2  ;;  %2285 = vcosq.f32 %v1163_v3  ;;  %v2007_v22 = vadd.s32 3, %v1164_v32  ;;  %v1168_v47 = vand.u32 3, %v1164_v32 }
 0x141   :  { %2094 = vst [vmem:[#allocation6 + $0x20] sm:$0xf0] %v2086_v49  ;;  %2095 = vst [vmem:[#allocation6 + $0x28] sm:$0xf0] %v2087_v19  ;;  %2287 = vsinq.f32 %v1163_v3  ;;  %vm343_vm0 = vcmp.eq.f32.partialorder %v3559_v53, 0.0  ;;  %v344_v16 = vand.u32 2147483648, %v3559_v53  ;;  %v342_v50 = vsel %vm341_vm6, %v3559_v53, %v340_v41 }
 0x142   :  { %2096 = vst [vmem:[#allocation6 + $0x30] sm:$0xf0] %v2088_v54  ;;  %v2008_v1 = vand.u32 3, %v2007_v22  ;;  %vm1173_vm13 = vcmp.eq.s32.totalorder %v1168_v47, 2  ;;  %vm1170_vm10 = vcmp.eq.s32.totalorder %v1168_v47, 0  ;;  %vm1169_vm14 = vcmp.lt.s32.totalorder %v1168_v47, 2 }
 0x143   :  { %v345_v8 = vsel %vm343_vm0, %v344_v16, %v342_v50 }
 0x144   :  { %vm2013_vm3 = vcmp.eq.s32.totalorder %v2008_v1, 2  ;;  %vm2010_vm11 = vcmp.eq.s32.totalorder %v2008_v1, 0  ;;  %vm2009_vm4 = vcmp.lt.s32.totalorder %v2008_v1, 2 }
 0x14a   :  { %v2286_v42 = vpop.eup %2285 }
 0x14b   :  { %v2288_v43 = vpop.eup %2287  ;;  %v1174_v26 = vxor.u32 2147483648, %v2286_v42 }
 0x14c   :  { %v1171_v30 = vxor.u32 2147483648, %v2288_v43 }
 0x14d   :  { %v1175_v20 = vsel %vm1173_vm13, %v1174_v26, %v2288_v43  ;;  %v2015_v56 = vsel %vm2013_vm3, %v1174_v26, %v2288_v43 }
 0x14e   :  { %v1172_v44 = vsel %vm1170_vm10, %v2286_v42, %v1171_v30  ;;  %v2012_v61 = vsel %vm2010_vm11, %v2286_v42, %v1171_v30 }
 0x14f   :  { %v1176_v25 = vsel %vm1169_vm14, %v1172_v44, %v1175_v20  ;;  %v2016_v62 = vsel %vm2009_vm4, %v2012_v61, %v2015_v56 }
 0x150   :  { %v1177_v46 = vsel %vm1167_vm1, nan, %v1176_v25  ;;  %v2017_v23 = vsel %vm1167_vm1, nan, %v2016_v62 }
 0x151   :  { %v1185_v5 = vmul.f32 %v1177_v46, %v345_v8  ;;  %v2025_v31 = vmul.f32 %v2017_v23, %v345_v8 }
 0x153   :  { %v2041_v63 = vadd.f32 %v2033_v17, %v1185_v5  ;;  %v2073_v24 = vrot.slane %v2025_v31, 4 }
 0x155   :  { %2049 = vst [vmem:[#allocation6 + $0x38] sm:$0xf] %v2041_v63  ;;  %v2089_v37 = vadd.f32 %v2073_v24, %v2057_v18 }
 0x157   :  { %2097 = vst [vmem:[#allocation6 + $0x38] sm:$0xf0] %v2089_v37 }
 0x158   :  { %2322 = shalt.err (!%p2319_p12)
}
 0x159   :  { %s2323_s26 = scalar_lea.hbm %s3478_s2, 1024 }
 0x15a   :  { %p2324_p13 = scmp.ne.s32.totalorder %s3478_s2, %s2323_s26  ;;  %p2327_p0 = scmp.lt.u32.totalorder %s2323_s26, %s3478_s2 }
 0x15c   :  { %p2329_p1 = pnand %p2327_p0, %p2324_p13 }
 0x15e   :  { %2332 = shalt.err (!%p2329_p1)
}
 0x15f   :  { %2107 = dma.vmem_to_hbm [thread:$0]  %s2105_s22, 1024, %s3478_s2, [#allocation5]  }
 0x160   :  { %2335 = dma.done.wait [#allocation5], 1024  }
 0x161   :  { %2336 = vsyncadd [#allocation5], 4294966272 }
 0x162   :  { %2111 = vsyncpa [#allocation4], 1 }
 0x163   :  { %2112 = vsyncpa [#allocation5], 1 }

</bundles_post_ra>
